<compile_context>
chip_gen: v7x
topology: tpu7x:2x2x1
jax: 0.10.0
libtpu: 0.0.40
codegen_flags: <defaults>
</compile_context>

<pallas_src>
import jax
import jax.numpy as jnp
import numpy as np
from jax.experimental import pallas as pl
from jax.experimental.pallas import tpu as pltpu


# ---------------------------------------------------------------------------
# Fused Pallas kernel: whole UpsampleBlock for one image per grid step.
# ---------------------------------------------------------------------------
def _fused_block_kernel(x_ref, u4_ref, wp_ref, wct_ref, we4_ref, w14_ref,
                        p1_ref, p2_ref, p3_ref, o_ref):
    # p1: (4, inter)    rows = [proj_bias, s1, alpha*s1, t1]
    # p2: (4, 4*inter)  rows = [ct_bias,   s2, alpha*s2, t2]         (group-tiled)
    # p3: (5, 4*Cout)   rows = [exp_bias, conv1_bias, s3, alpha*s3, t3] (group-tiled)
    def act_bn(y, bias, s_pos, s_neg, shift):
        # bias add, then PReLU folded into the BN scale: y * select(s, a*s) + shift
        y = y + bias
        return y * jnp.where(y >= 0.0, s_pos, s_neg) + shift

    f32 = jnp.float32
    x = x_ref[0]                                                    # (HW, Cin)

    # projection 1x1 conv + PReLU + bn1
    xr = act_bn(jnp.dot(x, wp_ref[...], preferred_element_type=f32),
                p1_ref[0:1, :], p1_ref[1:2, :], p1_ref[2:3, :], p1_ref[3:4, :])
    # ConvTranspose2d(k=2, s=2) == channel matmul into 4 sub-pixel groups, + PReLU + bn2
    y4 = act_bn(jnp.dot(xr, wct_ref[...], preferred_element_type=f32),
                p2_ref[0:1, :], p2_ref[1:2, :], p2_ref[2:3, :], p2_ref[3:4, :])
    # expansion 1x1 conv per group (block-diagonal weights) + PReLU + bn3
    z4 = act_bn(jnp.dot(y4, we4_ref[...], preferred_element_type=f32),
                p3_ref[0:1, :], p3_ref[2:3, :], p3_ref[3:4, :], p3_ref[4:5, :])
    # identity branch: conv1 on the upsampled (group-layout) input + PReLU + bn3
    id4 = act_bn(jnp.dot(u4_ref[0], w14_ref[...], preferred_element_type=f32),
                 p3_ref[1:2, :], p3_ref[2:3, :], p3_ref[3:4, :], p3_ref[4:5, :])

    # residual add fused; Dropout2d is identity in eval mode.
    o_ref[0] = z4 + id4


# ---------------------------------------------------------------------------
# Glue helpers (plain JAX, static slices only — no gather)
# ---------------------------------------------------------------------------
def fold_bn(gamma, beta, mean, var, eps=1e-5):
    scale = gamma / jnp.sqrt(var + eps)
    shift = beta - mean * scale
    return scale, shift


def _bilinear2x_group_layout(x_nhwc):
    """2x bilinear upsample (align_corners=False) emitted in group layout:
    (N, H*W, 4*C) where channel block g = 2*di + dj is the value at output pixel
    (2h+di, 2w+dj).  Built from static slices/concats, no XLA gather."""
    def prev_h(a): return jnp.concatenate([a[:, :1], a[:, :-1]], axis=1)
    def next_h(a): return jnp.concatenate([a[:, 1:], a[:, -1:]], axis=1)
    def prev_w(a): return jnp.concatenate([a[:, :, :1], a[:, :, :-1]], axis=2)
    def next_w(a): return jnp.concatenate([a[:, :, 1:], a[:, :, -1:]], axis=2)

    a0 = 0.25 * prev_h(x_nhwc) + 0.75 * x_nhwc        # output rows 2h
    a1 = 0.75 * x_nhwc + 0.25 * next_h(x_nhwc)        # output rows 2h+1
    groups = []
    for a in (a0, a1):
        groups.append(0.25 * prev_w(a) + 0.75 * a)    # output cols 2w
        groups.append(0.75 * a + 0.25 * next_w(a))    # output cols 2w+1
    u4 = jnp.concatenate(groups, axis=-1)             # (N, H, W, 4*C)
    n, h, w, c4 = u4.shape
    return u4.reshape(n, h * w, c4)


# ---------------------------------------------------------------------------
# UpsampleBlock forward (NCHW in / NCHW out, eval-mode BN & dropout)
# ---------------------------------------------------------------------------
def upsample_block_forward(x_nchw, params):
    # TODO(synk): Dropout2d / BatchNorm training-mode statistics not implemented
    #             (eval-mode semantics: dropout = identity, BN = folded running stats).
    x = jnp.transpose(x_nchw, (0, 2, 3, 1)).astype(jnp.float32)     # NCHW -> NHWC
    N, H, W, Cin = x.shape
    Cout = params["conv1_w"].shape[0]
    inter = params["proj_w"].shape[0]
    HW = H * W
    alpha = jnp.asarray(params["prelu_alpha"], jnp.float32)

    s1, t1 = fold_bn(*params["bn1"])
    s2, t2 = fold_bn(*params["bn2"])
    s3, t3 = fold_bn(*params["bn3"])

    # -- weights in matmul layout -------------------------------------------------
    wp = params["proj_w"][:, :, 0, 0].T                             # (Cin, inter)
    # ConvTranspose2d weight (in, out, kH, kW) -> (inter, g*inter + co), g = 2*di+dj
    wct = jnp.transpose(params["conv2_w"], (0, 2, 3, 1)).reshape(inter, 4 * inter)
    eye4 = jnp.eye(4, dtype=jnp.float32)
    we4 = jnp.kron(eye4, params["exp_w"][:, :, 0, 0].T)             # (4*inter, 4*Cout)
    w14 = jnp.kron(eye4, params["conv1_w"][:, :, 0, 0].T)           # (4*Cin,  4*Cout)

    # -- per-channel constants: bias / PReLU-folded BN scales / shift ---------------
    def tile4(v):
        return jnp.tile(v.astype(jnp.float32), 4)
    p1 = jnp.stack([params["proj_b"], s1, alpha * s1, t1]).astype(jnp.float32)
    p2 = jnp.stack([tile4(params["conv2_b"]), tile4(s2), tile4(alpha * s2), tile4(t2)])
    p3 = jnp.stack([tile4(params["exp_b"]), tile4(params["conv1_b"]),
                    tile4(s3), tile4(alpha * s3), tile4(t3)])

    # -- inputs ---------------------------------------------------------------------
    x2 = x.reshape(N, HW, Cin)
    u4 = _bilinear2x_group_layout(x)                                # (N, HW, 4*Cin)

    out4 = pl.pallas_call(
        _fused_block_kernel,
        out_shape=jax.ShapeDtypeStruct((N, HW, 4 * Cout), jnp.float32),
        grid=(N,),
        in_specs=[
            pl.BlockSpec((1, HW, Cin), lambda n: (n, 0, 0)),
            pl.BlockSpec((1, HW, 4 * Cin), lambda n: (n, 0, 0)),
            pl.BlockSpec((Cin, inter), lambda n: (0, 0)),
            pl.BlockSpec((inter, 4 * inter), lambda n: (0, 0)),
            pl.BlockSpec((4 * inter, 4 * Cout), lambda n: (0, 0)),
            pl.BlockSpec((4 * Cin, 4 * Cout), lambda n: (0, 0)),
            pl.BlockSpec((4, inter), lambda n: (0, 0)),
            pl.BlockSpec((4, 4 * inter), lambda n: (0, 0)),
            pl.BlockSpec((5, 4 * Cout), lambda n: (0, 0)),
        ],
        out_specs=pl.BlockSpec((1, HW, 4 * Cout), lambda n: (n, 0, 0)),
        compiler_params=pltpu.CompilerParams(dimension_semantics=("parallel",)),
    )(x2, u4, wp, wct, we4, w14, p1, p2, p3)

    # group layout (h, w, di, dj, co) -> NCHW (n, co, 2h+di, 2w+dj): the pixel shuffle
    # folds into the single output transpose that NCHW requires anyway.
    out = out4.reshape(N, H, W, 2, 2, Cout).transpose(0, 5, 1, 3, 2, 4)
    return out.reshape(N, Cout, 2 * H, 2 * W)


# ---------------------------------------------------------------------------
# Pure-JAX reference (mirrors the PyTorch forward, eval mode)
# ---------------------------------------------------------------------------
def _bilinear_upsample_2x_ref(x_nhwc):
    _, H, W, _ = x_nhwc.shape

    def up_axis(arr, axis, size):
        out_idx = jnp.arange(2 * size, dtype=jnp.float32)
        src = jnp.clip((out_idx + 0.5) / 2.0 - 0.5, 0.0, None)
        i0 = jnp.floor(src).astype(jnp.int32)
        frac = src - i0.astype(jnp.float32)
        i0 = jnp.clip(i0, 0, size - 1)
        i1 = jnp.clip(i0 + 1, 0, size - 1)
        a0 = jnp.take(arr, i0, axis=axis)
        a1 = jnp.take(arr, i1, axis=axis)
        shp = [1] * arr.ndim
        shp[axis] = 2 * size
        frac = frac.reshape(shp)
        return a0 * (1.0 - frac) + a1 * frac

    return up_axis(up_axis(x_nhwc, 1, H), 2, W)


def reference_forward(x_nchw, params):
    x = jnp.transpose(x_nchw, (0, 2, 3, 1)).astype(jnp.float32)
    Nb, H, W, _ = x.shape
    inter = params["proj_w"].shape[0]
    a = params["prelu_alpha"]
    hi = jax.lax.Precision.HIGHEST

    def prelu(v):
        return jnp.where(v >= 0, v, a * v)

    def bn(v, p):
        s, t = fold_bn(*p)
        return v * s + t

    def conv1x1(v, w, b):
        return jnp.einsum("nhwc,oc->nhwo", v, w[:, :, 0, 0], precision=hi) + b

    idn = _bilinear_upsample_2x_ref(x)
    identity = bn(prelu(conv1x1(idn, params["conv1_w"], params["conv1_b"])), params["bn3"])

    xr = bn(prelu(conv1x1(x, params["proj_w"], params["proj_b"])), params["bn1"])
    y = jnp.einsum("nhwc,codk->nhwdko", xr, params["conv2_w"], precision=hi) + params["conv2_b"]
    y = y.reshape(Nb, H, W, 2, 2, inter).transpose(0, 1, 3, 2, 4, 5).reshape(Nb, 2 * H, 2 * W, inter)
    y = bn(prelu(y), params["bn2"])
    y = bn(prelu(conv1x1(y, params["exp_w"], params["exp_b"])), params["bn3"])
    out = y + identity
    return jnp.transpose(out, (0, 3, 1, 2))


# ---------------------------------------------------------------------------
# Deterministic parameter init (shapes follow the PyTorch module __init__)
# ---------------------------------------------------------------------------
def init_params(key, in_channels, out_channels, ratio):
    inter = in_channels // ratio
    ks = jax.random.split(key, 24)

    def norm(k, shape, scale=0.1):
        return scale * jax.random.normal(k, shape, jnp.float32)

    def bn_params(k0, k1, k2, k3, c):
        gamma = 1.0 + norm(k0, (c,))
        beta = norm(k1, (c,))
        mean = norm(k2, (c,))
        var = 1.0 + jnp.abs(norm(k3, (c,)))
        return (gamma, beta, mean, var)

    return dict(
        conv1_w=norm(ks[0], (out_channels, in_channels, 1, 1)),
        conv1_b=norm(ks[1], (out_channels,)),
        proj_w=norm(ks[2], (inter, in_channels, 1, 1)),
        proj_b=norm(ks[3], (inter,)),
        conv2_w=norm(ks[4], (inter, inter, 2, 2)),   # ConvTranspose2d weight: (in, out, kH, kW)
        conv2_b=norm(ks[5], (inter,)),
        exp_w=norm(ks[6], (out_channels, inter, 1, 1)),
        exp_b=norm(ks[7], (out_channels,)),
        bn1=bn_params(ks[8], ks[9], ks[10], ks[11], inter),
        bn2=bn_params(ks[12], ks[13], ks[14], ks[15], inter),
        bn3=bn_params(ks[16], ks[17], ks[18], ks[19], out_channels),
        prelu_alpha=jnp.float32(0.25),               # nn.PReLU() default (single shared alpha)
    )


if __name__ == "__main__":
    key = jax.random.PRNGKey(0)
    kx, kp = jax.random.split(key)

    in_channels, out_channels, ratio, dropout_rate = 16, 32, 2, 0.1
    batch, H, W = 2, 16, 16

    x = jax.random.normal(kx, (batch, in_channels, H, W), jnp.float32)
    params = init_params(kp, in_channels, out_channels, ratio)

    out = jax.jit(upsample_block_forward)(x, params)
    out = jax.block_until_ready(out)

    assert out.shape == (batch, out_channels, 2 * H, 2 * W)
    ref = reference_forward(x, params)
    np.testing.assert_allclose(np.asarray(out), np.asarray(ref), rtol=1e-4, atol=1e-4)

    print("KERNEL_OK")
</pallas_src>

<mosaic_0001>
module attributes {stable_mosaic.version = 11 : i64} {
  func.func @_fused_block_kernel(%arg0: i32, %arg1: memref<1x256x16xf32, #tpu.memory_space<vmem>>, %arg2: memref<1x256x64xf32, #tpu.memory_space<vmem>>, %arg3: memref<16x8xf32, #tpu.memory_space<vmem>>, %arg4: memref<8x32xf32, #tpu.memory_space<vmem>>, %arg5: memref<32x128xf32, #tpu.memory_space<vmem>>, %arg6: memref<64x128xf32, #tpu.memory_space<vmem>>, %arg7: memref<4x8xf32, #tpu.memory_space<vmem>>, %arg8: memref<4x32xf32, #tpu.memory_space<vmem>>, %arg9: memref<5x128xf32, #tpu.memory_space<vmem>>, %arg10: memref<1x256x128xf32, #tpu.memory_space<vmem>>) attributes {dimension_semantics = [#tpu.dimension_semantics<parallel>], iteration_bounds = array<i64: 2>, scalar_prefetch = 0 : i64, scratch_operands = 0 : i64, tpu.core_type = #tpu.core_type<tc>, window_params = [{transform_indices = @transform_0, window_bounds = array<i64: 1, 256, 16>}, {transform_indices = @transform_1, window_bounds = array<i64: 1, 256, 64>}, {pipeline_mode = #tpu.pipeline_mode<synchronous>, transform_indices = @transform_2, window_bounds = array<i64: 16, 8>}, {pipeline_mode = #tpu.pipeline_mode<synchronous>, transform_indices = @transform_3, window_bounds = array<i64: 8, 32>}, {pipeline_mode = #tpu.pipeline_mode<synchronous>, transform_indices = @transform_4, window_bounds = array<i64: 32, 128>}, {pipeline_mode = #tpu.pipeline_mode<synchronous>, transform_indices = @transform_5, window_bounds = array<i64: 64, 128>}, {pipeline_mode = #tpu.pipeline_mode<synchronous>, transform_indices = @transform_6, window_bounds = array<i64: 4, 8>}, {pipeline_mode = #tpu.pipeline_mode<synchronous>, transform_indices = @transform_7, window_bounds = array<i64: 4, 32>}, {pipeline_mode = #tpu.pipeline_mode<synchronous>, transform_indices = @transform_8, window_bounds = array<i64: 5, 128>}, {transform_indices = @transform_9, window_bounds = array<i64: 1, 256, 128>}]} {
    %c0 = arith.constant 0 : index
    %c0_0 = arith.constant 0 : index
    %c0_1 = arith.constant 0 : index
    %0 = vector.load %arg1[%c0, %c0_0, %c0_1] : memref<1x256x16xf32, #tpu.memory_space<vmem>>, vector<1x256x16xf32>
    %1 = vector.shape_cast %0 : vector<1x256x16xf32> to vector<256x16xf32>
    %c0_2 = arith.constant 0 : index
    %c0_3 = arith.constant 0 : index
    %2 = vector.load %arg3[%c0_2, %c0_3] : memref<16x8xf32, #tpu.memory_space<vmem>>, vector<16x8xf32>
    %cst = arith.constant dense<0.000000e+00> : vector<256x8xf32>
    %3 = tpu.matmul %1, %2, %cst {dimension_numbers = #tpu.dot_dimension_numbers<[1], [0], [0], [1], [0, 0, 1, 1], [], []>} : vector<256x16xf32>, vector<16x8xf32>, vector<256x8xf32> -> vector<256x8xf32>
    %c0_4 = arith.constant 0 : index
    %c0_5 = arith.constant 0 : index
    %4 = vector.load %arg7[%c0_4, %c0_5] : memref<4x8xf32, #tpu.memory_space<vmem>>, vector<1x8xf32>
    %c1 = arith.constant 1 : index
    %c0_6 = arith.constant 0 : index
    %5 = vector.load %arg7[%c1, %c0_6] : memref<4x8xf32, #tpu.memory_space<vmem>>, vector<1x8xf32>
    %c2 = arith.constant 2 : index
    %c0_7 = arith.constant 0 : index
    %6 = vector.load %arg7[%c2, %c0_7] : memref<4x8xf32, #tpu.memory_space<vmem>>, vector<1x8xf32>
    %c3 = arith.constant 3 : index
    %c0_8 = arith.constant 0 : index
    %7 = vector.load %arg7[%c3, %c0_8] : memref<4x8xf32, #tpu.memory_space<vmem>>, vector<1x8xf32>
    %8 = vector.broadcast %4 : vector<1x8xf32> to vector<256x8xf32>
    %9 = arith.addf %3, %8 : vector<256x8xf32>
    %cst_9 = arith.constant 0.000000e+00 : f32
    %10 = vector.broadcast %cst_9 : f32 to vector<256x8xf32>
    %11 = arith.cmpf oge, %9, %10 : vector<256x8xf32>
    %12 = vector.shape_cast %5 : vector<1x8xf32> to vector<1x8xf32>
    %13 = vector.broadcast %12 : vector<1x8xf32> to vector<256x8xf32>
    %14 = vector.shape_cast %6 : vector<1x8xf32> to vector<1x8xf32>
    %15 = vector.broadcast %14 : vector<1x8xf32> to vector<256x8xf32>
    %16 = arith.select %11, %13, %15 : vector<256x8xi1>, vector<256x8xf32>
    %17 = arith.mulf %9, %16 : vector<256x8xf32>
    %18 = vector.broadcast %7 : vector<1x8xf32> to vector<256x8xf32>
    %19 = arith.addf %17, %18 : vector<256x8xf32>
    %c0_10 = arith.constant 0 : index
    %c0_11 = arith.constant 0 : index
    %20 = vector.load %arg4[%c0_10, %c0_11] : memref<8x32xf32, #tpu.memory_space<vmem>>, vector<8x32xf32>
    %cst_12 = arith.constant dense<0.000000e+00> : vector<256x32xf32>
    %21 = tpu.matmul %19, %20, %cst_12 {dimension_numbers = #tpu.dot_dimension_numbers<[1], [0], [0], [1], [0, 0, 1, 1], [], []>} : vector<256x8xf32>, vector<8x32xf32>, vector<256x32xf32> -> vector<256x32xf32>
    %c0_13 = arith.constant 0 : index
    %c0_14 = arith.constant 0 : index
    %22 = vector.load %arg8[%c0_13, %c0_14] : memref<4x32xf32, #tpu.memory_space<vmem>>, vector<1x32xf32>
    %c1_15 = arith.constant 1 : index
    %c0_16 = arith.constant 0 : index
    %23 = vector.load %arg8[%c1_15, %c0_16] : memref<4x32xf32, #tpu.memory_space<vmem>>, vector<1x32xf32>
    %c2_17 = arith.constant 2 : index
    %c0_18 = arith.constant 0 : index
    %24 = vector.load %arg8[%c2_17, %c0_18] : memref<4x32xf32, #tpu.memory_space<vmem>>, vector<1x32xf32>
    %c3_19 = arith.constant 3 : index
    %c0_20 = arith.constant 0 : index
    %25 = vector.load %arg8[%c3_19, %c0_20] : memref<4x32xf32, #tpu.memory_space<vmem>>, vector<1x32xf32>
    %26 = vector.broadcast %22 : vector<1x32xf32> to vector<256x32xf32>
    %27 = arith.addf %21, %26 : vector<256x32xf32>
    %cst_21 = arith.constant 0.000000e+00 : f32
    %28 = vector.broadcast %cst_21 : f32 to vector<256x32xf32>
    %29 = arith.cmpf oge, %27, %28 : vector<256x32xf32>
    %30 = vector.shape_cast %23 : vector<1x32xf32> to vector<1x32xf32>
    %31 = vector.broadcast %30 : vector<1x32xf32> to vector<256x32xf32>
    %32 = vector.shape_cast %24 : vector<1x32xf32> to vector<1x32xf32>
    %33 = vector.broadcast %32 : vector<1x32xf32> to vector<256x32xf32>
    %34 = arith.select %29, %31, %33 : vector<256x32xi1>, vector<256x32xf32>
    %35 = arith.mulf %27, %34 : vector<256x32xf32>
    %36 = vector.broadcast %25 : vector<1x32xf32> to vector<256x32xf32>
    %37 = arith.addf %35, %36 : vector<256x32xf32>
    %c0_22 = arith.constant 0 : index
    %c0_23 = arith.constant 0 : index
    %38 = vector.load %arg5[%c0_22, %c0_23] : memref<32x128xf32, #tpu.memory_space<vmem>>, vector<32x128xf32>
    %cst_24 = arith.constant dense<0.000000e+00> : vector<256x128xf32>
    %39 = tpu.matmul %37, %38, %cst_24 {dimension_numbers = #tpu.dot_dimension_numbers<[1], [0], [0], [1], [0, 0, 1, 1], [], []>} : vector<256x32xf32>, vector<32x128xf32>, vector<256x128xf32> -> vector<256x128xf32>
    %c0_25 = arith.constant 0 : index
    %c0_26 = arith.constant 0 : index
    %40 = vector.load %arg9[%c0_25, %c0_26] : memref<5x128xf32, #tpu.memory_space<vmem>>, vector<1x128xf32>
    %c2_27 = arith.constant 2 : index
    %c0_28 = arith.constant 0 : index
    %41 = vector.load %arg9[%c2_27, %c0_28] : memref<5x128xf32, #tpu.memory_space<vmem>>, vector<1x128xf32>
    %c3_29 = arith.constant 3 : index
    %c0_30 = arith.constant 0 : index
    %42 = vector.load %arg9[%c3_29, %c0_30] : memref<5x128xf32, #tpu.memory_space<vmem>>, vector<1x128xf32>
    %c4 = arith.constant 4 : index
    %c0_31 = arith.constant 0 : index
    %43 = vector.load %arg9[%c4, %c0_31] : memref<5x128xf32, #tpu.memory_space<vmem>>, vector<1x128xf32>
    %44 = vector.broadcast %40 : vector<1x128xf32> to vector<256x128xf32>
    %45 = arith.addf %39, %44 : vector<256x128xf32>
    %cst_32 = arith.constant 0.000000e+00 : f32
    %46 = vector.broadcast %cst_32 : f32 to vector<256x128xf32>
    %47 = arith.cmpf oge, %45, %46 : vector<256x128xf32>
    %48 = vector.shape_cast %41 : vector<1x128xf32> to vector<1x128xf32>
    %49 = vector.broadcast %48 : vector<1x128xf32> to vector<256x128xf32>
    %50 = vector.shape_cast %42 : vector<1x128xf32> to vector<1x128xf32>
    %51 = vector.broadcast %50 : vector<1x128xf32> to vector<256x128xf32>
    %52 = arith.select %47, %49, %51 : vector<256x128xi1>, vector<256x128xf32>
    %53 = arith.mulf %45, %52 : vector<256x128xf32>
    %54 = vector.broadcast %43 : vector<1x128xf32> to vector<256x128xf32>
    %55 = arith.addf %53, %54 : vector<256x128xf32>
    %c0_33 = arith.constant 0 : index
    %c0_34 = arith.constant 0 : index
    %c0_35 = arith.constant 0 : index
    %56 = vector.load %arg2[%c0_33, %c0_34, %c0_35] : memref<1x256x64xf32, #tpu.memory_space<vmem>>, vector<1x256x64xf32>
    %57 = vector.shape_cast %56 : vector<1x256x64xf32> to vector<256x64xf32>
    %c0_36 = arith.constant 0 : index
    %c0_37 = arith.constant 0 : index
    %58 = vector.load %arg6[%c0_36, %c0_37] : memref<64x128xf32, #tpu.memory_space<vmem>>, vector<64x128xf32>
    %cst_38 = arith.constant dense<0.000000e+00> : vector<256x128xf32>
    %59 = tpu.matmul %57, %58, %cst_38 {dimension_numbers = #tpu.dot_dimension_numbers<[1], [0], [0], [1], [0, 0, 1, 1], [], []>} : vector<256x64xf32>, vector<64x128xf32>, vector<256x128xf32> -> vector<256x128xf32>
    %c1_39 = arith.constant 1 : index
    %c0_40 = arith.constant 0 : index
    %60 = vector.load %arg9[%c1_39, %c0_40] : memref<5x128xf32, #tpu.memory_space<vmem>>, vector<1x128xf32>
    %c2_41 = arith.constant 2 : index
    %c0_42 = arith.constant 0 : index
    %61 = vector.load %arg9[%c2_41, %c0_42] : memref<5x128xf32, #tpu.memory_space<vmem>>, vector<1x128xf32>
    %c3_43 = arith.constant 3 : index
    %c0_44 = arith.constant 0 : index
    %62 = vector.load %arg9[%c3_43, %c0_44] : memref<5x128xf32, #tpu.memory_space<vmem>>, vector<1x128xf32>
    %c4_45 = arith.constant 4 : index
    %c0_46 = arith.constant 0 : index
    %63 = vector.load %arg9[%c4_45, %c0_46] : memref<5x128xf32, #tpu.memory_space<vmem>>, vector<1x128xf32>
    %64 = vector.broadcast %60 : vector<1x128xf32> to vector<256x128xf32>
    %65 = arith.addf %59, %64 : vector<256x128xf32>
    %cst_47 = arith.constant 0.000000e+00 : f32
    %66 = vector.broadcast %cst_47 : f32 to vector<256x128xf32>
    %67 = arith.cmpf oge, %65, %66 : vector<256x128xf32>
    %68 = vector.shape_cast %61 : vector<1x128xf32> to vector<1x128xf32>
    %69 = vector.broadcast %68 : vector<1x128xf32> to vector<256x128xf32>
    %70 = vector.shape_cast %62 : vector<1x128xf32> to vector<1x128xf32>
    %71 = vector.broadcast %70 : vector<1x128xf32> to vector<256x128xf32>
    %72 = arith.select %67, %69, %71 : vector<256x128xi1>, vector<256x128xf32>
    %73 = arith.mulf %65, %72 : vector<256x128xf32>
    %74 = vector.broadcast %63 : vector<1x128xf32> to vector<256x128xf32>
    %75 = arith.addf %73, %74 : vector<256x128xf32>
    %76 = arith.addf %55, %75 : vector<256x128xf32>
    %c0_48 = arith.constant 0 : index
    %c0_49 = arith.constant 0 : index
    %c0_50 = arith.constant 0 : index
    %77 = vector.load %arg10[%c0_48, %c0_49, %c0_50] : memref<1x256x128xf32, #tpu.memory_space<vmem>>, vector<1x256x128xf32>
    %78 = vector.shape_cast %77 : vector<1x256x128xf32> to vector<256x128xf32>
    %79 = vector.shape_cast %76 : vector<256x128xf32> to vector<1x256x128xf32>
    tpu.vector_store %arg10[%c0_48, %c0_49, %c0_50], %79 {strides = array<i32>} : memref<1x256x128xf32, #tpu.memory_space<vmem>>, vector<1x256x128xf32>,
    return
  }
  func.func @transform_0(%arg0: i32) -> (i32, i32, i32) {
    %c0_i32 = arith.constant 0 : i32
    %c0_i32_0 = arith.constant 0 : i32
    %c0_i32_1 = arith.constant 0 : i32
    return %arg0, %c0_i32, %c0_i32_0 : i32, i32, i32
  }
  func.func @transform_1(%arg0: i32) -> (i32, i32, i32) {
    %c0_i32 = arith.constant 0 : i32
    %c0_i32_0 = arith.constant 0 : i32
    %c0_i32_1 = arith.constant 0 : i32
    return %arg0, %c0_i32, %c0_i32_0 : i32, i32, i32
  }
  func.func @transform_2(%arg0: i32) -> (i32, i32) {
    %c0_i32 = arith.constant 0 : i32
    %c0_i32_0 = arith.constant 0 : i32
    %c0_i32_1 = arith.constant 0 : i32
    return %c0_i32, %c0_i32_0 : i32, i32
  }
  func.func @transform_3(%arg0: i32) -> (i32, i32) {
    %c0_i32 = arith.constant 0 : i32
    %c0_i32_0 = arith.constant 0 : i32
    %c0_i32_1 = arith.constant 0 : i32
    return %c0_i32, %c0_i32_0 : i32, i32
  }
  func.func @transform_4(%arg0: i32) -> (i32, i32) {
    %c0_i32 = arith.constant 0 : i32
    %c0_i32_0 = arith.constant 0 : i32
    %c0_i32_1 = arith.constant 0 : i32
    return %c0_i32, %c0_i32_0 : i32, i32
  }
  func.func @transform_5(%arg0: i32) -> (i32, i32) {
    %c0_i32 = arith.constant 0 : i32
    %c0_i32_0 = arith.constant 0 : i32
    %c0_i32_1 = arith.constant 0 : i32
    return %c0_i32, %c0_i32_0 : i32, i32
  }
  func.func @transform_6(%arg0: i32) -> (i32, i32) {
    %c0_i32 = arith.constant 0 : i32
    %c0_i32_0 = arith.constant 0 : i32
    %c0_i32_1 = arith.constant 0 : i32
    return %c0_i32, %c0_i32_0 : i32, i32
  }
  func.func @transform_7(%arg0: i32) -> (i32, i32) {
    %c0_i32 = arith.constant 0 : i32
    %c0_i32_0 = arith.constant 0 : i32
    %c0_i32_1 = arith.constant 0 : i32
    return %c0_i32, %c0_i32_0 : i32, i32
  }
  func.func @transform_8(%arg0: i32) -> (i32, i32) {
    %c0_i32 = arith.constant 0 : i32
    %c0_i32_0 = arith.constant 0 : i32
    %c0_i32_1 = arith.constant 0 : i32
    return %c0_i32, %c0_i32_0 : i32, i32
  }
  func.func @transform_9(%arg0: i32) -> (i32, i32, i32) {
    %c0_i32 = arith.constant 0 : i32
    %c0_i32_0 = arith.constant 0 : i32
    %c0_i32_1 = arith.constant 0 : i32
    return %arg0, %c0_i32, %c0_i32_0 : i32, i32, i32
  }
}

</mosaic_0001>

<bundles_post_ra>
// kernel: tile.60
= control target key start
LH: loop header
LB: loop body
LE: loop exit
PB: predicated region body
PF: predicated region fallthrough
CT: control target
= control target key end

     0   :  { %s22_s0 = inlined_call_operand.vmem [shape: f32[8], index: 0, kind: input, shape index: {}]   ;;  %s23_s1 = inlined_call_operand.vmem [shape: f32[4,8], index: 1, kind: output, shape index: {}]  }
   0x1   :  { %v4_v0 = vld [vmem:[%s22_s0] ss:$0 sm:$0xff] }
   0x2   :  { %5 = vst [vmem:[%s23_s1] sm:$0xf] %v4_v0 }

// kernel: tile.64
= control target key start
LH: loop header
LB: loop body
LE: loop exit
PB: predicated region body
PF: predicated region fallthrough
CT: control target
= control target key end

     0   :  { %vm7_vm0 = vcmask 64512   ;;  %s37_s8 = smov 8   ;;  %s38_s9 = smov 16   ;;  %vm13_vm1 = vcmask 261312   ;;  %vm19_vm2 = vcmask 195712   ;;  %vm25_vm3 = vcmask 130112   ;;  %s55_s0 = inlined_call_operand.vmem [shape: f32[4,8], index: 0, kind: input, shape index: {}]   ;;  %s56_s1 = inlined_call_operand.vmem [shape: f32[1,32], index: 1, kind: output, shape index: {}]  }
   0x1   :  { %v4_v0 = vld [vmem:[%s55_s0] sm:$0xf]  ;;  %s36_s0 = smov 24  }
   0x2   :  { %5 = vst [vmem:[#allocation1] sm:$0xf] %v4_v0 }
   0x9   :  { %v10_v1 = vld [vmem:[#allocation1 + $0x3] sm:$0x1]   ;;  %v22_v2 = vld [vmem:[#allocation1 + $0x1] sm:$0x1]   ;;  %v6_v3 = vld [vmem:[#allocation1] sm:$0x1]  }
   0xa   :  { %11 = vrot.lane.b32.xlu0 %v10_v1, %s36_s0  ;;  %23 = vrot.lane.b32.xlu1 %v22_v2, %s37_s8  ;;  %v16_v4 = vld [vmem:[#allocation1 + $0x2] sm:$0x1]   ;;  %8 = vst.msk [vmem:[#allocation0] sm:$0x1] %vm7_vm0, %v6_v3  }
   0xe   :  { %17 = vrot.lane.b32.xlu0 %v16_v4, %s38_s9 }
  0x7c   :  { %v12_v5 = vpop.permute.xlu0 %11   ;;  %v24_v6 = vpop.permute.xlu1 %23  }
  0x7d   :  { %14 = vst.msk [vmem:[#allocation0] sm:$0x1] %vm13_vm1, %v12_v5  }
  0x80   :  { %v18_v7 = vpop.permute.xlu0 %17  }
  0x81   :  { %20 = vst.msk [vmem:[#allocation0] sm:$0x1] %vm19_vm2, %v18_v7  }
  0x82   :  { %26 = vst.msk [vmem:[#allocation0] sm:$0x1] %vm25_vm3, %v24_v6  }
  0x89   :  { %v30_v8 = vld [vmem:[#allocation0] sm:$0x1] }
  0x8a   :  { %32 = vst [vmem:[%s56_s1] sm:$0x1] %v30_v8 }

// kernel: tile.80
= control target key start
LH: loop header
LB: loop body
LE: loop exit
PB: predicated region body
PF: predicated region fallthrough
CT: control target
= control target key end

     0   :  { %s22_s0 = inlined_call_operand.vmem [shape: f32[32], index: 0, kind: input, shape index: {}]   ;;  %s23_s1 = inlined_call_operand.vmem [shape: f32[4,32], index: 1, kind: output, shape index: {}]  }
   0x1   :  { %v4_v0 = vld [vmem:[%s22_s0] ss:$0 sm:$0xff] }
   0x2   :  { %5 = vst [vmem:[%s23_s1] sm:$0xf] %v4_v0 }

// kernel: tile.88
= control target key start
LH: loop header
LB: loop body
LE: loop exit
PB: predicated region body
PF: predicated region fallthrough
CT: control target
= control target key end

     0   :  { %vm7_vm0 = vcmask 261120   ;;  %s37_s8 = smov 32   ;;  %s38_s9 = smov 64   ;;  %vm13_vm1 = vcmask 1048320   ;;  %vm19_vm2 = vcmask 785920   ;;  %vm25_vm3 = vcmask 523520   ;;  %s55_s0 = inlined_call_operand.vmem [shape: f32[4,32], index: 0, kind: input, shape index: {}]   ;;  %s56_s1 = inlined_call_operand.vmem [shape: f32[1,128], index: 1, kind: output, shape index: {}]  }
   0x1   :  { %v4_v0 = vld [vmem:[%s55_s0] sm:$0xf]  ;;  %s36_s0 = smov 96  }
   0x2   :  { %5 = vst [vmem:[#allocation1] sm:$0xf] %v4_v0 }
   0x9   :  { %v10_v1 = vld [vmem:[#allocation1 + $0x3] sm:$0x1]   ;;  %v22_v2 = vld [vmem:[#allocation1 + $0x1] sm:$0x1]   ;;  %v6_v3 = vld [vmem:[#allocation1] sm:$0x1]  }
   0xa   :  { %11 = vrot.lane.b32.xlu0 %v10_v1, %s36_s0  ;;  %23 = vrot.lane.b32.xlu1 %v22_v2, %s37_s8  ;;  %v16_v4 = vld [vmem:[#allocation1 + $0x2] sm:$0x1]   ;;  %8 = vst.msk [vmem:[#allocation0] sm:$0x1] %vm7_vm0, %v6_v3  }
   0xe   :  { %17 = vrot.lane.b32.xlu0 %v16_v4, %s38_s9 }
  0x7c   :  { %v12_v5 = vpop.permute.xlu0 %11   ;;  %v24_v6 = vpop.permute.xlu1 %23  }
  0x7d   :  { %14 = vst.msk [vmem:[#allocation0] sm:$0x1] %vm13_vm1, %v12_v5  }
  0x80   :  { %v18_v7 = vpop.permute.xlu0 %17  }
  0x81   :  { %20 = vst.msk [vmem:[#allocation0] sm:$0x1] %vm19_vm2, %v18_v7  }
  0x82   :  { %26 = vst.msk [vmem:[#allocation0] sm:$0x1] %vm25_vm3, %v24_v6  }
  0x89   :  { %v30_v8 = vld [vmem:[#allocation0] sm:$0x1] }
  0x8a   :  { %32 = vst [vmem:[%s56_s1] sm:$0x1] %v30_v8 }

// kernel: upsample_block_forward.1
= control target key start
LH: loop header
LB: loop body
LE: loop exit
PB: predicated region body
PF: predicated region fallthrough
CT: control target
= control target key end

     0   :  { %s3044_s30 = smov 0   ;;  %s4068_s0 = inlined_call_operand.vmem [shape: f32[2,256,16], index: 0, kind: input, shape index: {}]   ;;  %s4069_s1 = inlined_call_operand.vmem [shape: f32[2,256,64], index: 1, kind: input, shape index: {}]   ;;  %s4070_s2 = inlined_call_operand.vmem [shape: f32[16,8], index: 2, kind: input, shape index: {}]   ;;  %s4071_s3 = inlined_call_operand.vmem [shape: f32[8,32], index: 3, kind: input, shape index: {}]   ;;  %s4072_s4 = inlined_call_operand.vmem [shape: f32[32,128], index: 4, kind: input, shape index: {}]   ;;  %s4073_s5 = inlined_call_operand.vmem [shape: f32[64,128], index: 5, kind: input, shape index: {}]   ;;  %s4074_s6 = inlined_call_operand.vmem [shape: f32[4,8], index: 6, kind: input, shape index: {}]   ;;  %s4075_s7 = inlined_call_operand.vmem [shape: f32[4,32], index: 7, kind: input, shape index: {}]   ;;  %s4076_s8 = inlined_call_operand.vmem [shape: f32[5,128], index: 8, kind: input, shape index: {}]   ;;  %s4077_s9 = inlined_call_operand.vmem [shape: f32[2,256,128], index: 9, kind: output, shape index: {}]  }
   0x1 LB: > { %s2428_s10 = sadd.s32 4294967295, %s2992_s30   ;;  %p2432_p0 = scmp.ge.s32.totalorder %s2992_s30, 1  ;;  %s2992_s30 = sphi %s3044_s30, %s19_s30  }
   0x2   : > { %p297_p1 = scmp.lt.s32.totalorder %s2992_s30, 3 }
   0x4   : > { %p298_p2 = pnand %p2432_p0, %p297_p1 }
   0x5   : > { %v385_v0 = vld [vmem:[%s4070_s2] sm:$0xff] (!%p298_p2)  ;;  %v386_v1 = vld [vmem:[%s4070_s2 + $0x8] sm:$0xff] (!%p298_p2)  ;;  %p338_p3 = scmp.lt.s32.totalorder (!%p298_p2), %s2428_s10, 1  ;;  %vm395_vm0 = vcmask (!%p298_p2), 130048   ;;  %v1836_v41 = vld [vmem:[%s4073_s5 + $0x10] sm:$0xff] (!%p298_p2)  ;;  %vm866_vm4 = vcmask (!%p298_p2), 64512  }
   0x6   : > { %301 = sbr.rel (%p298_p2) target bundleno = 746 (0x2ea), region = 56  ;;  %v2950_v2 = vpack.c.bf16 (!%p298_p2), %v386_v1, %v385_v0  ;;  %v857_v35 = vld [vmem:[%s4071_s3] sm:$0xff] (!%p298_p2)  ;;  %v1329_v37 = vld [vmem:[%s4072_s4 + $0x8] sm:$0xff] (!%p298_p2)  ;;  %v1837_v42 = vld [vmem:[%s4073_s5 + $0x18] sm:$0xff] (!%p298_p2) }
   0x7   : > { %2780 = vmatprep.subr.mxu1 (!%p298_p2), %v857_v35  ;;  %v1328_v36 = vld [vmem:[%s4072_s4] sm:$0xff] (!%p298_p2)  ;;  %v1835_v40 = vld [vmem:[%s4073_s5 + $0x8] sm:$0xff] (!%p298_p2)  ;;  %v2966_v44 = vpack.c.bf16 (!%p298_p2), %v1837_v42, %v1836_v41  ;;  %v1840_v48 = vld [vmem:[%s4073_s5 + $0x30] sm:$0xff] (!%p298_p2) }
   0x8   : > { %2951 = vmatprep.subr.bf16.mxu0 (!%p298_p2), %v2950_v2  ;;  %2781 = vmatpush3.msra.mxu1 (!%p298_p2), %v857_v35  ;;  %v1834_v38 = vld [vmem:[%s4073_s5] sm:$0xff] (!%p298_p2)  ;;  %v2954_v39 = vpack.c.bf16 (!%p298_p2), %v1329_v37, %v1328_v36  ;;  %v1839_v46 = vld [vmem:[%s4073_s5 + $0x28] sm:$0xff] (!%p298_p2)  ;;  %v1841_v49 = vld [vmem:[%s4073_s5 + $0x38] sm:$0xff] (!%p298_p2) }
   0x9   : > { %2953 = vmatpush3.bf16.msra.mxu0 (!%p298_p2), %v2950_v2  ;;  %v2962_v43 = vpack.c.bf16 (!%p298_p2), %v1835_v40, %v1834_v38  ;;  %v1838_v45 = vld [vmem:[%s4073_s5 + $0x20] sm:$0xff] (!%p298_p2)  ;;  %v2974_v50 = vpack.c.bf16 (!%p298_p2), %v1841_v49, %v1840_v48  ;;  %v1330_v1 = vld [vmem:[%s4072_s4 + $0x10] sm:$0xff] (!%p298_p2)  ;;  %v1331_v2 = vld [vmem:[%s4072_s4 + $0x18] sm:$0xff] (!%p298_p2) }
   0xa   : > { %2955 = vmatprep.subr.bf16.mxu1 (!%p298_p2), %v2954_v39  ;;  %v2970_v47 = vpack.c.bf16 (!%p298_p2), %v1839_v46, %v1838_v45  ;;  %v3166_v51 = vld [vmem:[%s4074_s6] ss:$0 sm:$0xff] (!%p298_p2)  ;;  %v3171_v53 = vld [vmem:[%s4074_s6 + $0x1] ss:$0 sm:$0xff] (!%p298_p2)  ;;  %v3176_v54 = vld [vmem:[%s4074_s6 + $0x2] ss:$0 sm:$0xff] (!%p298_p2) }
   0xb   : > { %2963 = vmatprep.subr.bf16.mxu0 (!%p298_p2), %v2962_v43  ;;  %v3185_v60 = vld [vmem:[%s4074_s6 + $0x3] ss:$0 sm:$0xff] (!%p298_p2) }
   0xd   : > { %s4079_s10 = smov (!%p338_p3, %s2428_s10), 1 }
   0xe   : > { %s3058_s15 = sshll.u32 %s4079_s10, 8 }
   0xf   : > { %s3064_s18 = scalar_lea.vmem %s4068_s0, %s3058_s15  ;;  %s3353_s17 = scalar_lea.vmem %s4069_s1, %s3058_s15 }
  0x10   : > { %v353_v3 = vld [vmem:[%s3064_s18] sm:$0xff]  ;;  %v354_v4 = vld [vmem:[%s3064_s18 + $0x8] sm:$0xff]  ;;  %v355_v5 = vld [vmem:[%s3064_s18 + $0x10] sm:$0xff]  ;;  %s3797_s19 = scalar_lea.vmem %s4077_s9, %s3058_s15 }
  0x11   : > { %2732 = vmatprep.mubr.msk.f32.mxu0 %vm395_vm0, %v353_v3  ;;  %v356_v6 = vld [vmem:[%s3064_s18 + $0x18] sm:$0xff]  ;;  %v357_v7 = vld [vmem:[%s3064_s18 + $0x20] sm:$0xff]  ;;  %v358_v8 = vld [vmem:[%s3064_s18 + $0x28] sm:$0xff] }
  0x12   : > { %2733 = vmatmul.mubr.msk.f32.vlgmr.msra.gmra.mrb[0].mxu0 %vm395_vm0, %v354_v4  ;;  %v359_v9 = vld [vmem:[%s3064_s18 + $0x30] sm:$0xff]  ;;  %v360_v10 = vld [vmem:[%s3064_s18 + $0x38] sm:$0xff]  ;;  %v361_v11 = vld [vmem:[%s3064_s18 + $0x40] sm:$0xff] }
  0x13   : > { %2735 = vmatprep.mubr.msk.f32.mxu0 %vm395_vm0, %v355_v5  ;;  %v362_v12 = vld [vmem:[%s3064_s18 + $0x48] sm:$0xff]  ;;  %v363_v13 = vld [vmem:[%s3064_s18 + $0x50] sm:$0xff]  ;;  %v364_v14 = vld [vmem:[%s3064_s18 + $0x58] sm:$0xff]  ;;  %2965 = vmatpush3.bf16.msra.mxu0 %v2962_v43 }
  0x14   : > { %v365_v15 = vld [vmem:[%s3064_s18 + $0x60] sm:$0xff]  ;;  %v366_v16 = vld [vmem:[%s3064_s18 + $0x68] sm:$0xff]  ;;  %v367_v17 = vld [vmem:[%s3064_s18 + $0x70] sm:$0xff]  ;;  %2967 = vmatprep.subr.bf16.mxu0 %v2966_v44 }
  0x15   : > { %v368_v18 = vld [vmem:[%s3064_s18 + $0x78] sm:$0xff]  ;;  %v369_v19 = vld [vmem:[%s3064_s18 + $0x80] sm:$0xff]  ;;  %v370_v20 = vld [vmem:[%s3064_s18 + $0x88] sm:$0xff] }
  0x16   : > { %2736 = vmatmul.mubr.msk.f32.gmra.mrb[2].mxu0 %vm395_vm0, %v356_v6  ;;  %v371_v21 = vld [vmem:[%s3064_s18 + $0x90] sm:$0xff]  ;;  %v372_v22 = vld [vmem:[%s3064_s18 + $0x98] sm:$0xff]  ;;  %v373_v23 = vld [vmem:[%s3064_s18 + $0xa0] sm:$0xff] }
  0x17   : > { %2738 = vmatprep.mubr.msk.f32.mxu0 %vm395_vm0, %v357_v7  ;;  %v374_v24 = vld [vmem:[%s3064_s18 + $0xa8] sm:$0xff]  ;;  %v375_v25 = vld [vmem:[%s3064_s18 + $0xb0] sm:$0xff]  ;;  %v376_v26 = vld [vmem:[%s3064_s18 + $0xb8] sm:$0xff]  ;;  %2969 = vmatpush3.bf16.msra.mxu0 %v2966_v44 }
  0x18   : > { %v377_v27 = vld [vmem:[%s3064_s18 + $0xc0] sm:$0xff]  ;;  %v378_v28 = vld [vmem:[%s3064_s18 + $0xc8] sm:$0xff]  ;;  %v379_v29 = vld [vmem:[%s3064_s18 + $0xd0] sm:$0xff]  ;;  %2971 = vmatprep.subr.bf16.mxu0 %v2970_v47 }
  0x19   : > { %v380_v30 = vld [vmem:[%s3064_s18 + $0xd8] sm:$0xff]  ;;  %v381_v31 = vld [vmem:[%s3064_s18 + $0xe0] sm:$0xff]  ;;  %v382_v32 = vld [vmem:[%s3064_s18 + $0xe8] sm:$0xff] }
  0x1a   : > { %2739 = vmatmul.mubr.msk.f32.gmra.mrb[4].mxu0 %vm395_vm0, %v358_v8  ;;  %v383_v33 = vld [vmem:[%s3064_s18 + $0xf0] sm:$0xff]  ;;  %v384_v34 = vld [vmem:[%s3064_s18 + $0xf8] sm:$0xff]  ;;  %v2958_v8 = vpack.c.bf16 %v1331_v2, %v1330_v1 }
  0x1b   : > { %2741 = vmatprep.mubr.msk.f32.mxu0 %vm395_vm0, %v359_v9  ;;  %2973 = vmatpush3.bf16.msra.mxu0 %v2970_v47 }
  0x1c   : > { %2975 = vmatprep.subr.bf16.mxu0 %v2974_v50 }
  0x1e   : > { %2742 = vmatmul.mubr.msk.f32.gmra.mrb[6].mxu0 %vm395_vm0, %v360_v10 }
  0x1f   : > { %2744 = vmatprep.mubr.msk.f32.mxu0 %vm395_vm0, %v361_v11  ;;  %2977 = vmatpush3.bf16.msra.mxu0 %v2974_v50 }
  0x22   : > { %2745 = vmatmul.mubr.msk.f32.gmra.mrb[8].mxu0 %vm395_vm0, %v362_v12 }
  0x23   : > { %2747 = vmatprep.mubr.msk.f32.mxu0 %vm395_vm0, %v363_v13 }
  0x26   : > { %2748 = vmatmul.mubr.msk.f32.gmra.mrb[10].mxu0 %vm395_vm0, %v364_v14 }
  0x27   : > { %2750 = vmatprep.mubr.msk.f32.mxu0 %vm395_vm0, %v365_v15 }
  0x2a   : > { %2751 = vmatmul.mubr.msk.f32.gmra.mrb[12].mxu0 %vm395_vm0, %v366_v16 }
  0x2b   : > { %2753 = vmatprep.mubr.msk.f32.mxu0 %vm395_vm0, %v367_v17 }
  0x2e   : > { %2754 = vmatmul.mubr.msk.f32.gmra.mrb[14].mxu0 %vm395_vm0, %v368_v18 }
  0x2f   : > { %2756 = vmatprep.mubr.msk.f32.mxu0 %vm395_vm0, %v369_v19 }
  0x32   : > { %2757 = vmatmul.mubr.msk.f32.gmra.mrb[16].mxu0 %vm395_vm0, %v370_v20 }
  0x33   : > { %2759 = vmatprep.mubr.msk.f32.mxu0 %vm395_vm0, %v371_v21 }
  0x36   : > { %2760 = vmatmul.mubr.msk.f32.gmra.mrb[18].mxu0 %vm395_vm0, %v372_v22 }
  0x37   : > { %2762 = vmatprep.mubr.msk.f32.mxu0 %vm395_vm0, %v373_v23 }
  0x3a   : > { %2763 = vmatmul.mubr.msk.f32.gmra.mrb[20].mxu0 %vm395_vm0, %v374_v24 }
  0x3b   : > { %2765 = vmatprep.mubr.msk.f32.mxu0 %vm395_vm0, %v375_v25 }
  0x3e   : > { %2766 = vmatmul.mubr.msk.f32.gmra.mrb[22].mxu0 %vm395_vm0, %v376_v26 }
  0x3f   : > { %2768 = vmatprep.mubr.msk.f32.mxu0 %vm395_vm0, %v377_v27 }
  0x42   : > { %2769 = vmatmul.mubr.msk.f32.gmra.mrb[24].mxu0 %vm395_vm0, %v378_v28 }
  0x43   : > { %2771 = vmatprep.mubr.msk.f32.mxu0 %vm395_vm0, %v379_v29 }
  0x46   : > { %2772 = vmatmul.mubr.msk.f32.gmra.mrb[26].mxu0 %vm395_vm0, %v380_v30 }
  0x47   : > { %2774 = vmatprep.mubr.msk.f32.mxu0 %vm395_vm0, %v381_v31 }
  0x4a   : > { %2775 = vmatmul.mubr.msk.f32.gmra.mrb[28].mxu0 %vm395_vm0, %v382_v32 }
  0x4b   : > { %2777 = vmatprep.mubr.msk.f32.mxu0 %vm395_vm0, %v383_v33 }
  0x4e   : > { %2778 = vmatmul.mubr.msk.f32.gmra.mrb[30].mxu0 %vm395_vm0, %v384_v34 }
  0xe5   : > { %v2734_v52 = vpop.f32.mrb[0].mxu0 }
  0xe6   : > { %v564_v55 = vadd.f32 %v2734_v52, %v3166_v51  ;;  %v558_v56 = vpop.f32.mrb[1].mxu0 }
  0xe7   : > { %v559_v57 = vadd.f32 %v3166_v51, %v558_v56 }
  0xe8   : > { %vm718_vm1 = vcmp.ge.f32.partialorder %v564_v55, 0.0 }
  0xe9   : > { %v758_v58 = vsel %vm718_vm1, %v3171_v53, %v3176_v54  ;;  %vm717_vm2 = vcmp.ge.f32.partialorder %v559_v57, 0.0  ;;  %v2737_v59 = vpop.f32.mrb[2].mxu0 }
  0xea   : > { %v790_v61 = vmul.f32 %v758_v58, %v564_v55  ;;  %v757_v62 = vsel %vm717_vm2, %v3171_v53, %v3176_v54  ;;  %v574_v63 = vadd.f32 %v2737_v59, %v3166_v51  ;;  %v568_v0 = vpop.f32.mrb[3].mxu0 }
  0xeb   : > { %v789_v3 = vmul.f32 %v757_v62, %v559_v57  ;;  %v569_v4 = vadd.f32 %v3166_v51, %v568_v0 }
  0xec   : > { %vm720_vm3 = vcmp.ge.f32.partialorder %v574_v63, 0.0  ;;  %v826_v9 = vadd.f32 %v3185_v60, %v790_v61 }
  0xed   : > { %v760_v5 = vsel %vm720_vm3, %v3171_v53, %v3176_v54  ;;  %vm719_vm5 = vcmp.ge.f32.partialorder %v569_v4, 0.0  ;;  %v2740_v6 = vpop.f32.mrb[4].mxu0  ;;  %v825_v7 = vadd.f32 %v3185_v60, %v789_v3 }
  0xee   : > { %v792_v10 = vmul.f32 %v760_v5, %v574_v63  ;;  %v759_v11 = vsel %vm719_vm5, %v3171_v53, %v3176_v54  ;;  %v584_v12 = vadd.f32 %v2740_v6, %v3166_v51  ;;  %v578_v13 = vpop.f32.mrb[5].mxu0 }
  0xef   : > { %v791_v14 = vmul.f32 %v759_v11, %v569_v4  ;;  %v579_v15 = vadd.f32 %v3166_v51, %v578_v13  ;;  %2782 = vmatprep.mubr.msk.f32.mxu1 %vm866_vm4, %v825_v7 }
  0xf0   : > { %vm722_vm6 = vcmp.ge.f32.partialorder %v584_v12, 0.0  ;;  %2783 = vmatmul.mubr.msk.f32.vlgmr.msra.gmra.mrb[0].mxu1 %vm866_vm4, %v826_v9  ;;  %v828_v19 = vadd.f32 %v3185_v60, %v792_v10 }
  0xf1   : > { %v827_v16 = vadd.f32 %v3185_v60, %v791_v14  ;;  %v762_v17 = vsel %vm722_vm6, %v3171_v53, %v3176_v54  ;;  %vm721_vm7 = vcmp.ge.f32.partialorder %v579_v15, 0.0  ;;  %v2743_v18 = vpop.f32.mrb[6].mxu0  ;;  %2957 = vmatpush3.bf16.msra.mxu1 %v2954_v39 }
  0xf2   : > { %v794_v20 = vmul.f32 %v762_v17, %v584_v12  ;;  %v761_v21 = vsel %vm721_vm7, %v3171_v53, %v3176_v54  ;;  %v594_v22 = vadd.f32 %v2743_v18, %v3166_v51  ;;  %v588_v23 = vpop.f32.mrb[7].mxu0  ;;  %2959 = vmatprep.subr.bf16.mxu1 %v2958_v8 }
  0xf3   : > { %v793_v24 = vmul.f32 %v761_v21, %v579_v15  ;;  %v589_v25 = vadd.f32 %v3166_v51, %v588_v23  ;;  %2785 = vmatprep.mubr.msk.f32.mxu1 %vm866_vm4, %v827_v16 }
  0xf4   : > { %vm724_vm8 = vcmp.ge.f32.partialorder %v594_v22, 0.0  ;;  %2786 = vmatmul.mubr.msk.f32.gmra.mrb[2].mxu1 %vm866_vm4, %v828_v19  ;;  %v830_v29 = vadd.f32 %v3185_v60, %v794_v20 }
  0xf5   : > { %v829_v26 = vadd.f32 %v3185_v60, %v793_v24  ;;  %v764_v27 = vsel %vm724_vm8, %v3171_v53, %v3176_v54  ;;  %vm723_vm9 = vcmp.ge.f32.partialorder %v589_v25, 0.0  ;;  %v2746_v28 = vpop.f32.mrb[8].mxu0  ;;  %2961 = vmatpush3.bf16.msra.mxu1 %v2958_v8 }
  0xf6   : > { %v796_v30 = vmul.f32 %v764_v27, %v594_v22  ;;  %v763_v31 = vsel %vm723_vm9, %v3171_v53, %v3176_v54  ;;  %v604_v32 = vadd.f32 %v2746_v28, %v3166_v51  ;;  %v598_v33 = vpop.f32.mrb[9].mxu0 }
  0xf7   : > { %v795_v34 = vmul.f32 %v763_v31, %v589_v25  ;;  %v599_v35 = vadd.f32 %v3166_v51, %v598_v33  ;;  %2788 = vmatprep.mubr.msk.f32.mxu1 %vm866_vm4, %v829_v26 }
  0xf8   : > { %vm726_vm10 = vcmp.ge.f32.partialorder %v604_v32, 0.0  ;;  %2789 = vmatmul.mubr.msk.f32.gmra.mrb[4].mxu1 %vm866_vm4, %v830_v29  ;;  %v832_v39 = vadd.f32 %v3185_v60, %v796_v30 }
  0xf9   : > { %v831_v36 = vadd.f32 %v3185_v60, %v795_v34  ;;  %v766_v37 = vsel %vm726_vm10, %v3171_v53, %v3176_v54  ;;  %vm725_vm11 = vcmp.ge.f32.partialorder %v599_v35, 0.0  ;;  %v2749_v38 = vpop.f32.mrb[10].mxu0 }
  0xfa   : > { %v798_v40 = vmul.f32 %v766_v37, %v604_v32  ;;  %v765_v41 = vsel %vm725_vm11, %v3171_v53, %v3176_v54  ;;  %v614_v42 = vadd.f32 %v2749_v38, %v3166_v51  ;;  %v608_v43 = vpop.f32.mrb[11].mxu0 }
  0xfb   : > { %v797_v44 = vmul.f32 %v765_v41, %v599_v35  ;;  %v609_v45 = vadd.f32 %v3166_v51, %v608_v43  ;;  %2791 = vmatprep.mubr.msk.f32.mxu1 %vm866_vm4, %v831_v36 }
  0xfc   : > { %vm728_vm12 = vcmp.ge.f32.partialorder %v614_v42, 0.0  ;;  %2792 = vmatmul.mubr.msk.f32.gmra.mrb[6].mxu1 %vm866_vm4, %v832_v39  ;;  %v834_v49 = vadd.f32 %v3185_v60, %v798_v40 }
  0xfd   : > { %v833_v46 = vadd.f32 %v3185_v60, %v797_v44  ;;  %v768_v47 = vsel %vm728_vm12, %v3171_v53, %v3176_v54  ;;  %vm727_vm13 = vcmp.ge.f32.partialorder %v609_v45, 0.0  ;;  %v2752_v48 = vpop.f32.mrb[12].mxu0 }
  0xfe   : > { %v800_v50 = vmul.f32 %v768_v47, %v614_v42  ;;  %v767_v52 = vsel %vm727_vm13, %v3171_v53, %v3176_v54  ;;  %v624_v55 = vadd.f32 %v2752_v48, %v3166_v51  ;;  %v618_v56 = vpop.f32.mrb[13].mxu0 }
  0xff   : > { %v799_v57 = vmul.f32 %v767_v52, %v609_v45  ;;  %v619_v58 = vadd.f32 %v3166_v51, %v618_v56  ;;  %2794 = vmatprep.mubr.msk.f32.mxu1 %vm866_vm4, %v833_v46 }
 0x100   : > { %vm730_vm14 = vcmp.ge.f32.partialorder %v624_v55, 0.0  ;;  %2795 = vmatmul.mubr.msk.f32.gmra.mrb[8].mxu1 %vm866_vm4, %v834_v49  ;;  %v836_v63 = vadd.f32 %v3185_v60, %v800_v50 }
 0x101   : > { %v835_v59 = vadd.f32 %v3185_v60, %v799_v57  ;;  %v770_v61 = vsel %vm730_vm14, %v3171_v53, %v3176_v54  ;;  %vm729_vm15 = vcmp.ge.f32.partialorder %v619_v58, 0.0  ;;  %v2755_v62 = vpop.f32.mrb[14].mxu0 }
 0x102   : > { %v802_v0 = vmul.f32 %v770_v61, %v624_v55  ;;  %v769_v1 = vsel %vm729_vm15, %v3171_v53, %v3176_v54  ;;  %v634_v2 = vadd.f32 %v2755_v62, %v3166_v51  ;;  %v628_v3 = vpop.f32.mrb[15].mxu0 }
 0x103   : > { %v801_v4 = vmul.f32 %v769_v1, %v619_v58  ;;  %v629_v5 = vadd.f32 %v3166_v51, %v628_v3  ;;  %2797 = vmatprep.mubr.msk.f32.mxu1 %vm866_vm4, %v835_v59 }
 0x104   : > { %vm732_vm0 = vcmp.ge.f32.partialorder %v634_v2, 0.0  ;;  %2798 = vmatmul.mubr.msk.f32.gmra.mrb[10].mxu1 %vm866_vm4, %v836_v63  ;;  %v838_v9 = vadd.f32 %v3185_v60, %v802_v0 }
 0x105   : > { %v837_v6 = vadd.f32 %v3185_v60, %v801_v4  ;;  %v772_v7 = vsel %vm732_vm0, %v3171_v53, %v3176_v54  ;;  %vm731_vm1 = vcmp.ge.f32.partialorder %v629_v5, 0.0  ;;  %v2758_v8 = vpop.f32.mrb[16].mxu0 }
 0x106   : > { %v804_v10 = vmul.f32 %v772_v7, %v634_v2  ;;  %v771_v11 = vsel %vm731_vm1, %v3171_v53, %v3176_v54  ;;  %v644_v12 = vadd.f32 %v2758_v8, %v3166_v51  ;;  %v638_v13 = vpop.f32.mrb[17].mxu0 }
 0x107   : > { %v803_v14 = vmul.f32 %v771_v11, %v629_v5  ;;  %v639_v15 = vadd.f32 %v3166_v51, %v638_v13  ;;  %2800 = vmatprep.mubr.msk.f32.mxu1 %vm866_vm4, %v837_v6 }
 0x108   : > { %vm734_vm2 = vcmp.ge.f32.partialorder %v644_v12, 0.0  ;;  %2801 = vmatmul.mubr.msk.f32.gmra.mrb[12].mxu1 %vm866_vm4, %v838_v9  ;;  %v840_v19 = vadd.f32 %v3185_v60, %v804_v10 }
 0x109   : > { %v839_v16 = vadd.f32 %v3185_v60, %v803_v14  ;;  %v774_v17 = vsel %vm734_vm2, %v3171_v53, %v3176_v54  ;;  %vm733_vm3 = vcmp.ge.f32.partialorder %v639_v15, 0.0  ;;  %v2761_v18 = vpop.f32.mrb[18].mxu0 }
 0x10a   : > { %v806_v20 = vmul.f32 %v774_v17, %v644_v12  ;;  %v773_v21 = vsel %vm733_vm3, %v3171_v53, %v3176_v54  ;;  %v654_v22 = vadd.f32 %v2761_v18, %v3166_v51  ;;  %v648_v23 = vpop.f32.mrb[19].mxu0  ;;  %vm1847_vm3 = vcmask 523264  }
 0x10b   : > { %v805_v24 = vmul.f32 %v773_v21, %v639_v15  ;;  %v649_v25 = vadd.f32 %v3166_v51, %v648_v23  ;;  %2803 = vmatprep.mubr.msk.f32.mxu1 %vm866_vm4, %v839_v16 }
 0x10c   : > { %vm736_vm5 = vcmp.ge.f32.partialorder %v654_v22, 0.0  ;;  %2804 = vmatmul.mubr.msk.f32.gmra.mrb[14].mxu1 %vm866_vm4, %v840_v19  ;;  %v842_v29 = vadd.f32 %v3185_v60, %v806_v20 }
 0x10d   : > { %v841_v26 = vadd.f32 %v3185_v60, %v805_v24  ;;  %v776_v27 = vsel %vm736_vm5, %v3171_v53, %v3176_v54  ;;  %vm735_vm6 = vcmp.ge.f32.partialorder %v649_v25, 0.0  ;;  %v2764_v28 = vpop.f32.mrb[20].mxu0 }
 0x10e   : > { %v808_v30 = vmul.f32 %v776_v27, %v654_v22  ;;  %v775_v31 = vsel %vm735_vm6, %v3171_v53, %v3176_v54  ;;  %v664_v32 = vadd.f32 %v2764_v28, %v3166_v51  ;;  %v658_v33 = vpop.f32.mrb[21].mxu0 }
 0x10f   : > { %v807_v34 = vmul.f32 %v775_v31, %v649_v25  ;;  %v659_v35 = vadd.f32 %v3166_v51, %v658_v33  ;;  %2806 = vmatprep.mubr.msk.f32.mxu1 %vm866_vm4, %v841_v26  ;;  %v1805_v33 = vld [vmem:[%s3353_s17 + $0x18] sm:$0xff] }
 0x110   : > { %vm738_vm7 = vcmp.ge.f32.partialorder %v664_v32, 0.0  ;;  %2807 = vmatmul.mubr.msk.f32.gmra.mrb[16].mxu1 %vm866_vm4, %v842_v29  ;;  %v844_v39 = vadd.f32 %v3185_v60, %v808_v30 }
 0x111   : > { %v843_v36 = vadd.f32 %v3185_v60, %v807_v34  ;;  %v778_v37 = vsel %vm738_vm7, %v3171_v53, %v3176_v54  ;;  %vm737_vm8 = vcmp.ge.f32.partialorder %v659_v35, 0.0  ;;  %v2767_v38 = vpop.f32.mrb[22].mxu0  ;;  %v1806_v34 = vld [vmem:[%s3353_s17 + $0x20] sm:$0xff]  ;;  %vm1340_vm7 = vcmask 261120  }
 0x112   : > { %v810_v40 = vmul.f32 %v778_v37, %v664_v32  ;;  %v777_v41 = vsel %vm737_vm8, %v3171_v53, %v3176_v54  ;;  %v674_v42 = vadd.f32 %v2767_v38, %v3166_v51  ;;  %v668_v43 = vpop.f32.mrb[23].mxu0  ;;  %v1809_v37 = vld [vmem:[%s3353_s17 + $0x38] sm:$0xff]  ;;  %v1810_v38 = vld [vmem:[%s3353_s17 + $0x40] sm:$0xff] }
 0x113   : > { %v809_v44 = vmul.f32 %v777_v41, %v659_v35  ;;  %v669_v45 = vadd.f32 %v3166_v51, %v668_v43  ;;  %2809 = vmatprep.mubr.msk.f32.mxu1 %vm866_vm4, %v843_v36  ;;  %v1807_v35 = vld [vmem:[%s3353_s17 + $0x28] sm:$0xff]  ;;  %v1808_v36 = vld [vmem:[%s3353_s17 + $0x30] sm:$0xff]  ;;  %v1813_v41 = vld [vmem:[%s3353_s17 + $0x58] sm:$0xff] }
 0x114   : > { %vm740_vm9 = vcmp.ge.f32.partialorder %v674_v42, 0.0  ;;  %2810 = vmatmul.mubr.msk.f32.gmra.mrb[18].mxu1 %vm866_vm4, %v844_v39  ;;  %v846_v49 = vadd.f32 %v3185_v60, %v810_v40  ;;  %v1811_v39 = vld [vmem:[%s3353_s17 + $0x48] sm:$0xff]  ;;  %v1812_v40 = vld [vmem:[%s3353_s17 + $0x50] sm:$0xff] }
 0x115   : > { %v845_v46 = vadd.f32 %v3185_v60, %v809_v44  ;;  %v780_v47 = vsel %vm740_vm9, %v3171_v53, %v3176_v54  ;;  %vm739_vm10 = vcmp.ge.f32.partialorder %v669_v45, 0.0  ;;  %v2770_v48 = vpop.f32.mrb[24].mxu0  ;;  %v1815_v43 = vld [vmem:[%s3353_s17 + $0x68] sm:$0xff]  ;;  %v1816_v44 = vld [vmem:[%s3353_s17 + $0x70] sm:$0xff] }
 0x116   : > { %v812_v50 = vmul.f32 %v780_v47, %v674_v42  ;;  %v779_v52 = vsel %vm739_vm10, %v3171_v53, %v3176_v54  ;;  %v684_v55 = vadd.f32 %v2770_v48, %v3166_v51  ;;  %v678_v56 = vpop.f32.mrb[25].mxu0  ;;  %v1814_v42 = vld [vmem:[%s3353_s17 + $0x60] sm:$0xff]  ;;  %v1819_v47 = vld [vmem:[%s3353_s17 + $0x88] sm:$0xff]  ;;  %v1820_v48 = vld [vmem:[%s3353_s17 + $0x90] sm:$0xff] }
 0x117   : > { %v811_v57 = vmul.f32 %v779_v52, %v669_v45  ;;  %v679_v58 = vadd.f32 %v3166_v51, %v678_v56  ;;  %2812 = vmatprep.mubr.msk.f32.mxu1 %vm866_vm4, %v845_v46  ;;  %v1817_v45 = vld [vmem:[%s3353_s17 + $0x78] sm:$0xff]  ;;  %v1818_v46 = vld [vmem:[%s3353_s17 + $0x80] sm:$0xff]  ;;  %v1823_v52 = vld [vmem:[%s3353_s17 + $0xa8] sm:$0xff] }
 0x118   : > { %vm742_vm11 = vcmp.ge.f32.partialorder %v684_v55, 0.0  ;;  %2813 = vmatmul.mubr.msk.f32.gmra.mrb[20].mxu1 %vm866_vm4, %v846_v49  ;;  %v848_v63 = vadd.f32 %v3185_v60, %v812_v50  ;;  %v1821_v49 = vld [vmem:[%s3353_s17 + $0x98] sm:$0xff]  ;;  %v1822_v50 = vld [vmem:[%s3353_s17 + $0xa0] sm:$0xff] }
 0x119   : > { %v847_v59 = vadd.f32 %v3185_v60, %v811_v57  ;;  %v782_v61 = vsel %vm742_vm11, %v3171_v53, %v3176_v54  ;;  %vm741_vm12 = vcmp.ge.f32.partialorder %v679_v58, 0.0  ;;  %v2773_v62 = vpop.f32.mrb[26].mxu0  ;;  %v1825_v56 = vld [vmem:[%s3353_s17 + $0xb8] sm:$0xff]  ;;  %v1826_v57 = vld [vmem:[%s3353_s17 + $0xc0] sm:$0xff] }
 0x11a   : > { %v814_v0 = vmul.f32 %v782_v61, %v684_v55  ;;  %v781_v1 = vsel %vm741_vm12, %v3171_v53, %v3176_v54  ;;  %v694_v2 = vadd.f32 %v2773_v62, %v3166_v51  ;;  %v688_v3 = vpop.f32.mrb[27].mxu0  ;;  %v1824_v55 = vld [vmem:[%s3353_s17 + $0xb0] sm:$0xff]  ;;  %v1829_v61 = vld [vmem:[%s3353_s17 + $0xd8] sm:$0xff]  ;;  %v1830_v62 = vld [vmem:[%s3353_s17 + $0xe0] sm:$0xff] }
 0x11b   : > { %v813_v4 = vmul.f32 %v781_v1, %v679_v58  ;;  %v689_v5 = vadd.f32 %v3166_v51, %v688_v3  ;;  %2815 = vmatprep.mubr.msk.f32.mxu1 %vm866_vm4, %v847_v59  ;;  %v1827_v58 = vld [vmem:[%s3353_s17 + $0xc8] sm:$0xff]  ;;  %v1828_v59 = vld [vmem:[%s3353_s17 + $0xd0] sm:$0xff]  ;;  %v1833_v1 = vld [vmem:[%s3353_s17 + $0xf8] sm:$0xff] }
 0x11c   : > { %vm744_vm13 = vcmp.ge.f32.partialorder %v694_v2, 0.0  ;;  %2816 = vmatmul.mubr.msk.f32.gmra.mrb[22].mxu1 %vm866_vm4, %v848_v63  ;;  %v850_v9 = vadd.f32 %v3185_v60, %v814_v0  ;;  %v1831_v63 = vld [vmem:[%s3353_s17 + $0xe8] sm:$0xff]  ;;  %v1832_v0 = vld [vmem:[%s3353_s17 + $0xf0] sm:$0xff] }
 0x11d   : > { %v849_v6 = vadd.f32 %v3185_v60, %v813_v4  ;;  %v784_v7 = vsel %vm744_vm13, %v3171_v53, %v3176_v54  ;;  %vm743_vm14 = vcmp.ge.f32.partialorder %v689_v5, 0.0  ;;  %v2776_v8 = vpop.f32.mrb[28].mxu0  ;;  %v3427_v4 = vld [vmem:[%s4075_s7 + $0x1] ss:$0 sm:$0xff] }
 0x11e   : > { %v816_v10 = vmul.f32 %v784_v7, %v694_v2  ;;  %v783_v11 = vsel %vm743_vm14, %v3171_v53, %v3176_v54  ;;  %v704_v12 = vadd.f32 %v2776_v8, %v3166_v51  ;;  %v698_v13 = vpop.f32.mrb[29].mxu0  ;;  %v3422_v2 = vld [vmem:[%s4075_s7] ss:$0 sm:$0xff] }
 0x11f   : > { %v815_v14 = vmul.f32 %v783_v11, %v689_v5  ;;  %v699_v15 = vadd.f32 %v3166_v51, %v698_v13  ;;  %2818 = vmatprep.mubr.msk.f32.mxu1 %vm866_vm4, %v849_v6  ;;  %v3432_v5 = vld [vmem:[%s4075_s7 + $0x2] ss:$0 sm:$0xff]  ;;  %v3441_v11 = vld [vmem:[%s4075_s7 + $0x3] ss:$0 sm:$0xff] }
 0x120   : > { %vm746_vm15 = vcmp.ge.f32.partialorder %v704_v12, 0.0  ;;  %2819 = vmatmul.mubr.msk.f32.gmra.mrb[24].mxu1 %vm866_vm4, %v850_v9  ;;  %v852_v19 = vadd.f32 %v3185_v60, %v816_v10 }
 0x121   : > { %v851_v16 = vadd.f32 %v3185_v60, %v815_v14  ;;  %v786_v17 = vsel %vm746_vm15, %v3171_v53, %v3176_v54  ;;  %vm745_vm0 = vcmp.ge.f32.partialorder %v699_v15, 0.0  ;;  %v2779_v18 = vpop.f32.mrb[30].mxu0 }
 0x122   : > { %v818_v20 = vmul.f32 %v786_v17, %v704_v12  ;;  %v785_v21 = vsel %vm745_vm0, %v3171_v53, %v3176_v54  ;;  %v714_v22 = vadd.f32 %v2779_v18, %v3166_v51  ;;  %v708_v23 = vpop.f32.mrb[31].mxu0 }
 0x123   : > { %v817_v24 = vmul.f32 %v785_v21, %v699_v15  ;;  %v709_v25 = vadd.f32 %v3166_v51, %v708_v23  ;;  %2821 = vmatprep.mubr.msk.f32.mxu1 %vm866_vm4, %v851_v16 }
 0x124   : > { %vm748_vm1 = vcmp.ge.f32.partialorder %v714_v22, 0.0  ;;  %2822 = vmatmul.mubr.msk.f32.gmra.mrb[26].mxu1 %vm866_vm4, %v852_v19  ;;  %v854_v28 = vadd.f32 %v3185_v60, %v818_v20 }
 0x125   : > { %v853_v26 = vadd.f32 %v3185_v60, %v817_v24  ;;  %v788_v27 = vsel %vm748_vm1, %v3171_v53, %v3176_v54  ;;  %vm747_vm2 = vcmp.ge.f32.partialorder %v709_v25, 0.0 }
 0x126   : > { %v820_v29 = vmul.f32 %v788_v27, %v714_v22  ;;  %v787_v30 = vsel %vm747_vm2, %v3171_v53, %v3176_v54  ;;  %v1802_v53 = vld [vmem:[%s3353_s17] sm:$0xff]  ;;  %v1803_v54 = vld [vmem:[%s3353_s17 + $0x8] sm:$0xff] }
 0x127   : > { %v819_v31 = vmul.f32 %v787_v30, %v709_v25  ;;  %2824 = vmatprep.mubr.msk.f32.mxu1 %vm866_vm4, %v853_v26  ;;  %2902 = vmatprep.mubr.msk.f32.mxu0 %vm1847_vm3, %v1802_v53 }
 0x128   : > { %2825 = vmatmul.mubr.msk.f32.gmra.mrb[28].mxu1 %vm866_vm4, %v854_v28  ;;  %v856_v32 = vadd.f32 %v3185_v60, %v820_v29  ;;  %2903 = vmatmul.mubr.msk.f32.vlgmr.msra.gmra.mrb[32].mxu0 %vm1847_vm3, %v1803_v54 }
 0x129   : > { %v855_v51 = vadd.f32 %v3185_v60, %v819_v31  ;;  %v1804_v60 = vld [vmem:[%s3353_s17 + $0x10] sm:$0xff] }
 0x12a   : > { %2905 = vmatprep.mubr.msk.f32.mxu0 %vm1847_vm3, %v1804_v60 }
 0x12b   : > { %2827 = vmatprep.mubr.msk.f32.mxu1 %vm866_vm4, %v855_v51 }
 0x12c   : > { %2828 = vmatmul.mubr.msk.f32.gmra.mrb[30].mxu1 %vm866_vm4, %v856_v32  ;;  %2906 = vmatmul.mubr.msk.f32.gmra.mrb[34].mxu0 %vm1847_vm3, %v1805_v33 }
 0x12d   : > { %2908 = vmatprep.mubr.msk.f32.mxu0 %vm1847_vm3, %v1806_v34 }
 0x130   : > { %2909 = vmatmul.mubr.msk.f32.gmra.mrb[36].mxu0 %vm1847_vm3, %v1807_v35 }
 0x131   : > { %2911 = vmatprep.mubr.msk.f32.mxu0 %vm1847_vm3, %v1808_v36 }
 0x134   : > { %2912 = vmatmul.mubr.msk.f32.gmra.mrb[38].mxu0 %vm1847_vm3, %v1809_v37 }
 0x135   : > { %2914 = vmatprep.mubr.msk.f32.mxu0 %vm1847_vm3, %v1810_v38 }
 0x138   : > { %2915 = vmatmul.mubr.msk.f32.gmra.mrb[40].mxu0 %vm1847_vm3, %v1811_v39 }
 0x139   : > { %2917 = vmatprep.mubr.msk.f32.mxu0 %vm1847_vm3, %v1812_v40 }
 0x13c   : > { %2918 = vmatmul.mubr.msk.f32.gmra.mrb[42].mxu0 %vm1847_vm3, %v1813_v41 }
 0x13d   : > { %2920 = vmatprep.mubr.msk.f32.mxu0 %vm1847_vm3, %v1814_v42 }
 0x140   : > { %2921 = vmatmul.mubr.msk.f32.gmra.mrb[44].mxu0 %vm1847_vm3, %v1815_v43 }
 0x141   : > { %2923 = vmatprep.mubr.msk.f32.mxu0 %vm1847_vm3, %v1816_v44 }
 0x144   : > { %2924 = vmatmul.mubr.msk.f32.gmra.mrb[46].mxu0 %vm1847_vm3, %v1817_v45 }
 0x145   : > { %2926 = vmatprep.mubr.msk.f32.mxu0 %vm1847_vm3, %v1818_v46 }
 0x148   : > { %2927 = vmatmul.mubr.msk.f32.gmra.mrb[48].mxu0 %vm1847_vm3, %v1819_v47 }
 0x149   : > { %2929 = vmatprep.mubr.msk.f32.mxu0 %vm1847_vm3, %v1820_v48 }
 0x14c   : > { %2930 = vmatmul.mubr.msk.f32.gmra.mrb[50].mxu0 %vm1847_vm3, %v1821_v49 }
 0x14d   : > { %2932 = vmatprep.mubr.msk.f32.mxu0 %vm1847_vm3, %v1822_v50 }
 0x150   : > { %2933 = vmatmul.mubr.msk.f32.gmra.mrb[52].mxu0 %vm1847_vm3, %v1823_v52 }
 0x151   : > { %2935 = vmatprep.mubr.msk.f32.mxu0 %vm1847_vm3, %v1824_v55 }
 0x154   : > { %2936 = vmatmul.mubr.msk.f32.gmra.mrb[54].mxu0 %vm1847_vm3, %v1825_v56 }
 0x155   : > { %2938 = vmatprep.mubr.msk.f32.mxu0 %vm1847_vm3, %v1826_v57 }
 0x158   : > { %2939 = vmatmul.mubr.msk.f32.gmra.mrb[56].mxu0 %vm1847_vm3, %v1827_v58 }
 0x159   : > { %2941 = vmatprep.mubr.msk.f32.mxu0 %vm1847_vm3, %v1828_v59 }
 0x15c   : > { %2942 = vmatmul.mubr.msk.f32.gmra.mrb[58].mxu0 %vm1847_vm3, %v1829_v61 }
 0x15d   : > { %2944 = vmatprep.mubr.msk.f32.mxu0 %vm1847_vm3, %v1830_v62 }
 0x160   : > { %2945 = vmatmul.mubr.msk.f32.gmra.mrb[60].mxu0 %vm1847_vm3, %v1831_v63 }
 0x161   : > { %2947 = vmatprep.mubr.msk.f32.mxu0 %vm1847_vm3, %v1832_v0 }
 0x164   : > { %2948 = vmatmul.mubr.msk.f32.gmra.mrb[62].mxu0 %vm1847_vm3, %v1833_v1 }
 0x1c3   : > { %v2784_v3 = vpop.f32.mrb[0].mxu1 }
 0x1c4   : > { %v1035_v6 = vadd.f32 %v2784_v3, %v3422_v2  ;;  %v1029_v7 = vpop.f32.mrb[1].mxu1 }
 0x1c5   : > { %v1030_v8 = vadd.f32 %v3422_v2, %v1029_v7 }
 0x1c6   : > { %vm1189_vm4 = vcmp.ge.f32.partialorder %v1035_v6, 0.0 }
 0x1c7   : > { %v1229_v9 = vsel %vm1189_vm4, %v3427_v4, %v3432_v5  ;;  %vm1188_vm5 = vcmp.ge.f32.partialorder %v1030_v8, 0.0  ;;  %v2787_v10 = vpop.f32.mrb[2].mxu1 }
 0x1c8   : > { %v1261_v12 = vmul.f32 %v1229_v9, %v1035_v6  ;;  %v1228_v13 = vsel %vm1188_vm5, %v3427_v4, %v3432_v5  ;;  %v1045_v14 = vadd.f32 %v2787_v10, %v3422_v2  ;;  %v1039_v15 = vpop.f32.mrb[3].mxu1 }
 0x1c9   : > { %v1260_v16 = vmul.f32 %v1228_v13, %v1030_v8  ;;  %v1040_v17 = vadd.f32 %v3422_v2, %v1039_v15 }
 0x1ca   : > { %vm1191_vm6 = vcmp.ge.f32.partialorder %v1045_v14, 0.0  ;;  %v1297_v21 = vadd.f32 %v3441_v11, %v1261_v12 }
 0x1cb   : > { %v1296_v18 = vadd.f32 %v3441_v11, %v1260_v16  ;;  %v1231_v19 = vsel %vm1191_vm6, %v3427_v4, %v3432_v5  ;;  %vm1190_vm8 = vcmp.ge.f32.partialorder %v1040_v17, 0.0  ;;  %v2790_v20 = vpop.f32.mrb[4].mxu1 }
 0x1cc   : > { %v1263_v22 = vmul.f32 %v1231_v19, %v1045_v14  ;;  %v1230_v23 = vsel %vm1190_vm8, %v3427_v4, %v3432_v5  ;;  %v1055_v24 = vadd.f32 %v2790_v20, %v3422_v2  ;;  %v1049_v25 = vpop.f32.mrb[5].mxu1 }
 0x1cd   : > { %v1262_v26 = vmul.f32 %v1230_v23, %v1040_v17  ;;  %v1050_v27 = vadd.f32 %v3422_v2, %v1049_v25  ;;  %2838 = vmatprep.mubr.msk.f32.mxu1 %vm1340_vm7, %v1296_v18 }
 0x1ce   : > { %vm1193_vm9 = vcmp.ge.f32.partialorder %v1055_v24, 0.0  ;;  %2839 = vmatmul.mubr.msk.f32.vlgmr.msra.gmra.mrb[32].mxu1 %vm1340_vm7, %v1297_v21  ;;  %v1299_v31 = vadd.f32 %v3441_v11, %v1263_v22 }
 0x1cf   : > { %v1298_v28 = vadd.f32 %v3441_v11, %v1262_v26  ;;  %v1233_v29 = vsel %vm1193_vm9, %v3427_v4, %v3432_v5  ;;  %vm1192_vm10 = vcmp.ge.f32.partialorder %v1050_v27, 0.0  ;;  %v2793_v30 = vpop.f32.mrb[6].mxu1 }
 0x1d0   : > { %v1265_v51 = vmul.f32 %v1233_v29, %v1055_v24  ;;  %v1232_v32 = vsel %vm1192_vm10, %v3427_v4, %v3432_v5  ;;  %v1065_v53 = vadd.f32 %v2793_v30, %v3422_v2  ;;  %v1059_v54 = vpop.f32.mrb[7].mxu1 }
 0x1d1   : > { %v1264_v60 = vmul.f32 %v1232_v32, %v1050_v27  ;;  %v1060_v33 = vadd.f32 %v3422_v2, %v1059_v54  ;;  %2841 = vmatprep.mubr.msk.f32.mxu1 %vm1340_vm7, %v1298_v28 }
 0x1d2   : > { %vm1195_vm11 = vcmp.ge.f32.partialorder %v1065_v53, 0.0  ;;  %2842 = vmatmul.mubr.msk.f32.gmra.mrb[34].mxu1 %vm1340_vm7, %v1299_v31  ;;  %v1301_v37 = vadd.f32 %v3441_v11, %v1265_v51 }
 0x1d3   : > { %v1300_v34 = vadd.f32 %v3441_v11, %v1264_v60  ;;  %v1235_v35 = vsel %vm1195_vm11, %v3427_v4, %v3432_v5  ;;  %vm1194_vm12 = vcmp.ge.f32.partialorder %v1060_v33, 0.0  ;;  %v2796_v36 = vpop.f32.mrb[8].mxu1 }
 0x1d4   : > { %v1267_v38 = vmul.f32 %v1235_v35, %v1065_v53  ;;  %v1234_v39 = vsel %vm1194_vm12, %v3427_v4, %v3432_v5  ;;  %v1075_v40 = vadd.f32 %v2796_v36, %v3422_v2  ;;  %v1069_v41 = vpop.f32.mrb[9].mxu1 }
 0x1d5   : > { %v1266_v42 = vmul.f32 %v1234_v39, %v1060_v33  ;;  %v1070_v43 = vadd.f32 %v3422_v2, %v1069_v41  ;;  %2844 = vmatprep.mubr.msk.f32.mxu1 %vm1340_vm7, %v1300_v34 }
 0x1d6   : > { %vm1197_vm13 = vcmp.ge.f32.partialorder %v1075_v40, 0.0  ;;  %2845 = vmatmul.mubr.msk.f32.gmra.mrb[36].mxu1 %vm1340_vm7, %v1301_v37  ;;  %v1303_v47 = vadd.f32 %v3441_v11, %v1267_v38 }
 0x1d7   : > { %v1302_v44 = vadd.f32 %v3441_v11, %v1266_v42  ;;  %v1237_v45 = vsel %vm1197_vm13, %v3427_v4, %v3432_v5  ;;  %vm1196_vm14 = vcmp.ge.f32.partialorder %v1070_v43, 0.0  ;;  %v2799_v46 = vpop.f32.mrb[10].mxu1 }
 0x1d8   : > { %v1269_v48 = vmul.f32 %v1237_v45, %v1075_v40  ;;  %v1236_v49 = vsel %vm1196_vm14, %v3427_v4, %v3432_v5  ;;  %v1085_v50 = vadd.f32 %v2799_v46, %v3422_v2  ;;  %v1079_v52 = vpop.f32.mrb[11].mxu1 }
 0x1d9   : > { %v1268_v55 = vmul.f32 %v1236_v49, %v1070_v43  ;;  %v1080_v56 = vadd.f32 %v3422_v2, %v1079_v52  ;;  %2847 = vmatprep.mubr.msk.f32.mxu1 %vm1340_vm7, %v1302_v44 }
 0x1da   : > { %vm1199_vm15 = vcmp.ge.f32.partialorder %v1085_v50, 0.0  ;;  %2848 = vmatmul.mubr.msk.f32.gmra.mrb[38].mxu1 %vm1340_vm7, %v1303_v47  ;;  %v1305_v61 = vadd.f32 %v3441_v11, %v1269_v48 }
 0x1db   : > { %v1304_v57 = vadd.f32 %v3441_v11, %v1268_v55  ;;  %v1239_v58 = vsel %vm1199_vm15, %v3427_v4, %v3432_v5  ;;  %vm1198_vm0 = vcmp.ge.f32.partialorder %v1080_v56, 0.0  ;;  %v2802_v59 = vpop.f32.mrb[12].mxu1 }
 0x1dc   : > { %v1271_v62 = vmul.f32 %v1239_v58, %v1085_v50  ;;  %v1238_v63 = vsel %vm1198_vm0, %v3427_v4, %v3432_v5  ;;  %v1095_v0 = vadd.f32 %v2802_v59, %v3422_v2  ;;  %v1089_v1 = vpop.f32.mrb[13].mxu1 }
 0x1dd   : > { %v1270_v3 = vmul.f32 %v1238_v63, %v1080_v56  ;;  %v1090_v6 = vadd.f32 %v3422_v2, %v1089_v1  ;;  %2850 = vmatprep.mubr.msk.f32.mxu1 %vm1340_vm7, %v1304_v57 }
 0x1de   : > { %vm1201_vm1 = vcmp.ge.f32.partialorder %v1095_v0, 0.0  ;;  %2851 = vmatmul.mubr.msk.f32.gmra.mrb[40].mxu1 %vm1340_vm7, %v1305_v61  ;;  %v1307_v10 = vadd.f32 %v3441_v11, %v1271_v62 }
 0x1df   : > { %v1306_v7 = vadd.f32 %v3441_v11, %v1270_v3  ;;  %v1241_v8 = vsel %vm1201_vm1, %v3427_v4, %v3432_v5  ;;  %vm1200_vm2 = vcmp.ge.f32.partialorder %v1090_v6, 0.0  ;;  %v2805_v9 = vpop.f32.mrb[14].mxu1 }
 0x1e0   : > { %v1273_v12 = vmul.f32 %v1241_v8, %v1095_v0  ;;  %v1240_v13 = vsel %vm1200_vm2, %v3427_v4, %v3432_v5  ;;  %v1105_v14 = vadd.f32 %v2805_v9, %v3422_v2  ;;  %v1099_v15 = vpop.f32.mrb[15].mxu1 }
 0x1e1   : > { %v1272_v16 = vmul.f32 %v1240_v13, %v1090_v6  ;;  %v1100_v17 = vadd.f32 %v3422_v2, %v1099_v15  ;;  %2853 = vmatprep.mubr.msk.f32.mxu1 %vm1340_vm7, %v1306_v7 }
 0x1e2   : > { %vm1203_vm3 = vcmp.ge.f32.partialorder %v1105_v14, 0.0  ;;  %2854 = vmatmul.mubr.msk.f32.gmra.mrb[42].mxu1 %vm1340_vm7, %v1307_v10  ;;  %v1309_v21 = vadd.f32 %v3441_v11, %v1273_v12 }
 0x1e3   : > { %v1308_v18 = vadd.f32 %v3441_v11, %v1272_v16  ;;  %v1243_v19 = vsel %vm1203_vm3, %v3427_v4, %v3432_v5  ;;  %vm1202_vm4 = vcmp.ge.f32.partialorder %v1100_v17, 0.0  ;;  %v2808_v20 = vpop.f32.mrb[16].mxu1 }
 0x1e4   : > { %v1275_v22 = vmul.f32 %v1243_v19, %v1105_v14  ;;  %v1242_v23 = vsel %vm1202_vm4, %v3427_v4, %v3432_v5  ;;  %v1115_v24 = vadd.f32 %v2808_v20, %v3422_v2  ;;  %v1109_v25 = vpop.f32.mrb[17].mxu1 }
 0x1e5   : > { %v1274_v26 = vmul.f32 %v1242_v23, %v1100_v17  ;;  %v1110_v27 = vadd.f32 %v3422_v2, %v1109_v25  ;;  %2856 = vmatprep.mubr.msk.f32.mxu1 %vm1340_vm7, %v1308_v18 }
 0x1e6   : > { %vm1205_vm5 = vcmp.ge.f32.partialorder %v1115_v24, 0.0  ;;  %2857 = vmatmul.mubr.msk.f32.gmra.mrb[44].mxu1 %vm1340_vm7, %v1309_v21  ;;  %v1311_v31 = vadd.f32 %v3441_v11, %v1275_v22 }
 0x1e7   : > { %v1310_v28 = vadd.f32 %v3441_v11, %v1274_v26  ;;  %v1245_v29 = vsel %vm1205_vm5, %v3427_v4, %v3432_v5  ;;  %vm1204_vm6 = vcmp.ge.f32.partialorder %v1110_v27, 0.0  ;;  %v2811_v30 = vpop.f32.mrb[18].mxu1 }
 0x1e8   : > { %v1277_v51 = vmul.f32 %v1245_v29, %v1115_v24  ;;  %v1244_v32 = vsel %vm1204_vm6, %v3427_v4, %v3432_v5  ;;  %v1125_v53 = vadd.f32 %v2811_v30, %v3422_v2  ;;  %v1119_v54 = vpop.f32.mrb[19].mxu1 }
 0x1e9   : > { %v1276_v60 = vmul.f32 %v1244_v32, %v1110_v27  ;;  %v1120_v33 = vadd.f32 %v3422_v2, %v1119_v54  ;;  %2859 = vmatprep.mubr.msk.f32.mxu1 %vm1340_vm7, %v1310_v28 }
 0x1ea   : > { %vm1207_vm8 = vcmp.ge.f32.partialorder %v1125_v53, 0.0  ;;  %2860 = vmatmul.mubr.msk.f32.gmra.mrb[46].mxu1 %vm1340_vm7, %v1311_v31  ;;  %v1313_v37 = vadd.f32 %v3441_v11, %v1277_v51 }
 0x1eb   : > { %v1312_v34 = vadd.f32 %v3441_v11, %v1276_v60  ;;  %v1247_v35 = vsel %vm1207_vm8, %v3427_v4, %v3432_v5  ;;  %vm1206_vm9 = vcmp.ge.f32.partialorder %v1120_v33, 0.0  ;;  %v2814_v36 = vpop.f32.mrb[20].mxu1 }
 0x1ec   : > { %v1279_v38 = vmul.f32 %v1247_v35, %v1125_v53  ;;  %v1246_v39 = vsel %vm1206_vm9, %v3427_v4, %v3432_v5  ;;  %v1135_v40 = vadd.f32 %v2814_v36, %v3422_v2  ;;  %v1129_v41 = vpop.f32.mrb[21].mxu1 }
 0x1ed   : > { %v1278_v42 = vmul.f32 %v1246_v39, %v1120_v33  ;;  %v1130_v43 = vadd.f32 %v3422_v2, %v1129_v41  ;;  %2862 = vmatprep.mubr.msk.f32.mxu1 %vm1340_vm7, %v1312_v34 }
 0x1ee   : > { %vm1209_vm10 = vcmp.ge.f32.partialorder %v1135_v40, 0.0  ;;  %2863 = vmatmul.mubr.msk.f32.gmra.mrb[48].mxu1 %vm1340_vm7, %v1313_v37  ;;  %v1315_v47 = vadd.f32 %v3441_v11, %v1279_v38 }
 0x1ef   : > { %v1314_v44 = vadd.f32 %v3441_v11, %v1278_v42  ;;  %v1249_v45 = vsel %vm1209_vm10, %v3427_v4, %v3432_v5  ;;  %vm1208_vm11 = vcmp.ge.f32.partialorder %v1130_v43, 0.0  ;;  %v2817_v46 = vpop.f32.mrb[22].mxu1 }
 0x1f0   : > { %v1281_v48 = vmul.f32 %v1249_v45, %v1135_v40  ;;  %v1248_v49 = vsel %vm1208_vm11, %v3427_v4, %v3432_v5  ;;  %v1145_v50 = vadd.f32 %v2817_v46, %v3422_v2  ;;  %v1139_v52 = vpop.f32.mrb[23].mxu1 }
 0x1f1   : > { %v1280_v55 = vmul.f32 %v1248_v49, %v1130_v43  ;;  %v1140_v56 = vadd.f32 %v3422_v2, %v1139_v52  ;;  %2865 = vmatprep.mubr.msk.f32.mxu1 %vm1340_vm7, %v1314_v44 }
 0x1f2   : > { %vm1211_vm12 = vcmp.ge.f32.partialorder %v1145_v50, 0.0  ;;  %2866 = vmatmul.mubr.msk.f32.gmra.mrb[50].mxu1 %vm1340_vm7, %v1315_v47  ;;  %v1317_v61 = vadd.f32 %v3441_v11, %v1281_v48 }
 0x1f3   : > { %v1316_v57 = vadd.f32 %v3441_v11, %v1280_v55  ;;  %v1251_v58 = vsel %vm1211_vm12, %v3427_v4, %v3432_v5  ;;  %vm1210_vm13 = vcmp.ge.f32.partialorder %v1140_v56, 0.0  ;;  %v2820_v59 = vpop.f32.mrb[24].mxu1 }
 0x1f4   : > { %v1283_v62 = vmul.f32 %v1251_v58, %v1145_v50  ;;  %v1250_v63 = vsel %vm1210_vm13, %v3427_v4, %v3432_v5  ;;  %v1155_v0 = vadd.f32 %v2820_v59, %v3422_v2  ;;  %v1149_v1 = vpop.f32.mrb[25].mxu1 }
 0x1f5   : > { %v1282_v3 = vmul.f32 %v1250_v63, %v1140_v56  ;;  %v1150_v6 = vadd.f32 %v3422_v2, %v1149_v1  ;;  %2868 = vmatprep.mubr.msk.f32.mxu1 %vm1340_vm7, %v1316_v57 }
 0x1f6   : > { %vm1213_vm14 = vcmp.ge.f32.partialorder %v1155_v0, 0.0  ;;  %2869 = vmatmul.mubr.msk.f32.gmra.mrb[52].mxu1 %vm1340_vm7, %v1317_v61  ;;  %v1319_v10 = vadd.f32 %v3441_v11, %v1283_v62 }
 0x1f7   : > { %v1318_v7 = vadd.f32 %v3441_v11, %v1282_v3  ;;  %v1253_v8 = vsel %vm1213_vm14, %v3427_v4, %v3432_v5  ;;  %vm1212_vm15 = vcmp.ge.f32.partialorder %v1150_v6, 0.0  ;;  %v2823_v9 = vpop.f32.mrb[26].mxu1 }
 0x1f8   : > { %v1285_v12 = vmul.f32 %v1253_v8, %v1155_v0  ;;  %v1252_v13 = vsel %vm1212_vm15, %v3427_v4, %v3432_v5  ;;  %v1165_v14 = vadd.f32 %v2823_v9, %v3422_v2  ;;  %v1159_v15 = vpop.f32.mrb[27].mxu1 }
 0x1f9   : > { %v1284_v16 = vmul.f32 %v1252_v13, %v1150_v6  ;;  %v1160_v17 = vadd.f32 %v3422_v2, %v1159_v15  ;;  %2871 = vmatprep.mubr.msk.f32.mxu1 %vm1340_vm7, %v1318_v7 }
 0x1fa   : > { %vm1215_vm0 = vcmp.ge.f32.partialorder %v1165_v14, 0.0  ;;  %2872 = vmatmul.mubr.msk.f32.gmra.mrb[54].mxu1 %vm1340_vm7, %v1319_v10  ;;  %v1321_v21 = vadd.f32 %v3441_v11, %v1285_v12 }
 0x1fb   : > { %v1320_v18 = vadd.f32 %v3441_v11, %v1284_v16  ;;  %v1255_v19 = vsel %vm1215_vm0, %v3427_v4, %v3432_v5  ;;  %vm1214_vm1 = vcmp.ge.f32.partialorder %v1160_v17, 0.0  ;;  %v2826_v20 = vpop.f32.mrb[28].mxu1  ;;  %v2904_v41 = vpop.f32.mrb[32].mxu0 }
 0x1fc   : > { %v1287_v22 = vmul.f32 %v1255_v19, %v1165_v14  ;;  %v1254_v23 = vsel %vm1214_vm1, %v3427_v4, %v3432_v5  ;;  %v1175_v24 = vadd.f32 %v2826_v20, %v3422_v2  ;;  %v1169_v25 = vpop.f32.mrb[29].mxu1  ;;  %v2010_v42 = vpop.f32.mrb[33].mxu0  ;;  %v3636_v14 = vld [vmem:[%s4076_s8 + $0x1] ss:$0 sm:$0xff]  ;;  %v3645_v19 = vld [vmem:[%s4076_s8 + $0x2] ss:$0 sm:$0xff] }
 0x1fd   : > { %v1286_v26 = vmul.f32 %v1254_v23, %v1160_v17  ;;  %v1170_v27 = vadd.f32 %v3422_v2, %v1169_v25  ;;  %2874 = vmatprep.mubr.msk.f32.mxu1 %vm1340_vm7, %v1320_v18  ;;  %v2016_v15 = vadd.f32 %v2904_v41, %v3636_v14  ;;  %v2011_v16 = vadd.f32 %v3636_v14, %v2010_v42  ;;  %v3650_v20 = vld [vmem:[%s4076_s8 + $0x3] ss:$0 sm:$0xff] }
 0x1fe   : > { %vm1217_vm2 = vcmp.ge.f32.partialorder %v1175_v24, 0.0  ;;  %2875 = vmatmul.mubr.msk.f32.gmra.mrb[56].mxu1 %vm1340_vm7, %v1321_v21  ;;  %v1323_v31 = vadd.f32 %v3441_v11, %v1287_v22 }
 0x1ff   : > { %v1322_v28 = vadd.f32 %v3441_v11, %v1286_v26  ;;  %v1257_v29 = vsel %vm1217_vm2, %v3427_v4, %v3432_v5  ;;  %vm1216_vm3 = vcmp.ge.f32.partialorder %v1170_v27, 0.0  ;;  %v2829_v30 = vpop.f32.mrb[30].mxu1  ;;  %v2907_v43 = vpop.f32.mrb[34].mxu0  ;;  %vm2169_vm6 = vcmp.ge.f32.partialorder %v2011_v16, 0.0 }
 0x200   : > { %v1289_v51 = vmul.f32 %v1257_v29, %v1175_v24  ;;  %v1256_v32 = vsel %vm1216_vm3, %v3427_v4, %v3432_v5  ;;  %v1185_v53 = vadd.f32 %v2829_v30, %v3422_v2  ;;  %v1179_v54 = vpop.f32.mrb[31].mxu1  ;;  %v2020_v44 = vpop.f32.mrb[35].mxu0  ;;  %v2026_v17 = vadd.f32 %v2907_v43, %v3636_v14 }
 0x201   : > { %v1288_v60 = vmul.f32 %v1256_v32, %v1170_v27  ;;  %v1180_v33 = vadd.f32 %v3422_v2, %v1179_v54  ;;  %2877 = vmatprep.mubr.msk.f32.mxu1 %vm1340_vm7, %v1322_v28  ;;  %v2021_v18 = vadd.f32 %v3636_v14, %v2020_v44  ;;  %v2201_v24 = vsel %vm2169_vm6, %v3645_v19, %v3650_v20  ;;  %v3670_v32 = vld [vmem:[%s4076_s8 + $0x4] ss:$0 sm:$0xff] }
 0x202   : > { %vm1219_vm4 = vcmp.ge.f32.partialorder %v1185_v53, 0.0  ;;  %2878 = vmatmul.mubr.msk.f32.gmra.mrb[58].mxu1 %vm1340_vm7, %v1323_v31  ;;  %v1325_v36 = vadd.f32 %v3441_v11, %v1289_v51  ;;  %vm2172_vm8 = vcmp.ge.f32.partialorder %v2026_v17, 0.0  ;;  %v2233_v29 = vmul.f32 %v2201_v24, %v2011_v16 }
 0x203   : > { %v1324_v34 = vadd.f32 %v3441_v11, %v1288_v60  ;;  %v1259_v35 = vsel %vm1219_vm4, %v3427_v4, %v3432_v5  ;;  %vm1218_vm5 = vcmp.ge.f32.partialorder %v1180_v33, 0.0  ;;  %v2910_v45 = vpop.f32.mrb[36].mxu0  ;;  %vm2171_vm9 = vcmp.ge.f32.partialorder %v2021_v18, 0.0 }
 0x204   : > { %v1291_v37 = vmul.f32 %v1259_v35, %v1185_v53  ;;  %v1258_v38 = vsel %vm1218_vm5, %v3427_v4, %v3432_v5  ;;  %v2030_v46 = vpop.f32.mrb[37].mxu0  ;;  %v2036_v21 = vadd.f32 %v2910_v45, %v3636_v14  ;;  %v2204_v25 = vsel %vm2172_vm8, %v3645_v19, %v3650_v20 }
 0x205   : > { %v1290_v39 = vmul.f32 %v1258_v38, %v1180_v33  ;;  %2880 = vmatprep.mubr.msk.f32.mxu1 %vm1340_vm7, %v1324_v34  ;;  %v2031_v22 = vadd.f32 %v3636_v14, %v2030_v46  ;;  %v2203_v28 = vsel %vm2171_vm9, %v3645_v19, %v3650_v20  ;;  %v2236_v30 = vmul.f32 %v2204_v25, %v2026_v17 }
 0x206   : > { %2881 = vmatmul.mubr.msk.f32.gmra.mrb[60].mxu1 %vm1340_vm7, %v1325_v36  ;;  %v1327_v40 = vadd.f32 %v3441_v11, %v1291_v37  ;;  %vm2174_vm10 = vcmp.ge.f32.partialorder %v2036_v21, 0.0  ;;  %v2235_v54 = vmul.f32 %v2203_v28, %v2021_v18  ;;  %v3679_v37 = vadd.f32 %v3670_v32, %v2233_v29 }
 0x207   : > { %v1326_v2 = vadd.f32 %v3441_v11, %v1290_v39  ;;  %v2913_v4 = vpop.f32.mrb[38].mxu0  ;;  %vm2173_vm11 = vcmp.ge.f32.partialorder %v2031_v22, 0.0  ;;  %v2206_v31 = vsel %vm2174_vm10, %v3645_v19, %v3650_v20  ;;  %v3682_v38 = vadd.f32 %v3670_v32, %v2236_v30 }
 0x208   : > { %v2040_v5 = vpop.f32.mrb[39].mxu0  ;;  %v2046_v26 = vadd.f32 %v2913_v4, %v3636_v14  ;;  %v2205_v51 = vsel %vm2173_vm11, %v3645_v19, %v3650_v20  ;;  %v2238_v33 = vmul.f32 %v2206_v31, %v2036_v21  ;;  %v3690_v42 = vadd.f32 %v3670_v32, %v2235_v54 }
 0x209   : > { %2883 = vmatprep.mubr.msk.f32.mxu1 %vm1340_vm7, %v1326_v2  ;;  %v2041_v53 = vadd.f32 %v3636_v14, %v2040_v5  ;;  %v2237_v34 = vmul.f32 %v2205_v51, %v2031_v22 }
 0x20a   : > { %2884 = vmatmul.mubr.msk.f32.gmra.mrb[62].mxu1 %vm1340_vm7, %v1327_v40  ;;  %vm2170_vm7 = vcmp.ge.f32.partialorder %v2016_v15, 0.0  ;;  %vm2176_vm12 = vcmp.ge.f32.partialorder %v2046_v26, 0.0  ;;  %v3695_v45 = vadd.f32 %v3670_v32, %v2238_v33 }
 0x20b   : > { %v2916_v47 = vpop.f32.mrb[40].mxu0  ;;  %v2202_v23 = vsel %vm2170_vm7, %v3645_v19, %v3650_v20  ;;  %v2208_v2 = vsel %vm2176_vm12, %v3645_v19, %v3650_v20  ;;  %vm2175_vm13 = vcmp.ge.f32.partialorder %v2041_v53, 0.0  ;;  %v3698_v46 = vadd.f32 %v3670_v32, %v2237_v34 }
 0x20c   : > { %v2050_v48 = vpop.f32.mrb[41].mxu0  ;;  %v2234_v27 = vmul.f32 %v2202_v23, %v2016_v15  ;;  %v2056_v60 = vadd.f32 %v2916_v47, %v3636_v14  ;;  %v2240_v5 = vmul.f32 %v2208_v2, %v2046_v26  ;;  %v2207_v47 = vsel %vm2175_vm13, %v3645_v19, %v3650_v20  ;;  %v3734_v23 = vld [vmem:[%s4076_s8] ss:$0 sm:$0xff] }
 0x20d   : > { %v2051_v35 = vadd.f32 %v3636_v14, %v2050_v48 }
 0x20e   : > { %v3676_v36 = vadd.f32 %v3670_v32, %v2234_v27  ;;  %vm2178_vm14 = vcmp.ge.f32.partialorder %v2056_v60, 0.0  ;;  %v3727_v21 = vadd.f32 %v3670_v32, %v2240_v5 }
 0x20f   : > { %v2919_v49 = vpop.f32.mrb[42].mxu0  ;;  %vm2177_vm15 = vcmp.ge.f32.partialorder %v2051_v35, 0.0 }
 0x210   : > { %v2060_v50 = vpop.f32.mrb[43].mxu0  ;;  %v2066_v39 = vadd.f32 %v2919_v49, %v3636_v14  ;;  %v2210_v49 = vsel %vm2178_vm14, %v3645_v19, %v3650_v20 }
 0x211   : > { %v2061_v40 = vadd.f32 %v3636_v14, %v2060_v50  ;;  %v2242_v15 = vmul.f32 %v2210_v49, %v2056_v60 }
 0x212   : > { %vm2180_vm0 = vcmp.ge.f32.partialorder %v2066_v39, 0.0 }
 0x213   : > { %v2922_v52 = vpop.f32.mrb[44].mxu0  ;;  %vm2179_vm1 = vcmp.ge.f32.partialorder %v2061_v40, 0.0  ;;  %v3744_v51 = vadd.f32 %v3670_v32, %v2242_v15 }
 0x214   : > { %v2070_v55 = vpop.f32.mrb[45].mxu0  ;;  %v2076_v41 = vadd.f32 %v2922_v52, %v3636_v14  ;;  %v2209_v52 = vsel %vm2177_vm15, %v3645_v19, %v3650_v20 }
 0x215   : > { %v2071_v43 = vadd.f32 %v3636_v14, %v2070_v55  ;;  %v2241_v17 = vmul.f32 %v2209_v52, %v2051_v35 }
 0x216   : > { %vm2182_vm2 = vcmp.ge.f32.partialorder %v2076_v41, 0.0 }
 0x217   : > { %v2925_v56 = vpop.f32.mrb[46].mxu0  ;;  %vm2181_vm3 = vcmp.ge.f32.partialorder %v2071_v43, 0.0  ;;  %v2214_v16 = vsel %vm2182_vm2, %v3645_v19, %v3650_v20 }
 0x218   : > { %v3599_v11 = vpop.f32.mrb[47].mxu0  ;;  %v2086_v44 = vadd.f32 %v2925_v56, %v3636_v14  ;;  %v2239_v56 = vmul.f32 %v2207_v47, %v2041_v53  ;;  %v2246_v25 = vmul.f32 %v2214_v16, %v2076_v41  ;;  %v3747_v53 = vadd.f32 %v3670_v32, %v2241_v17 }
 0x219   : > { %v2081_v4 = vadd.f32 %v3636_v14, %v3599_v11  ;;  %v2212_v11 = vsel %vm2180_vm0, %v3645_v19, %v3650_v20 }
 0x21a   : > { %vm2184_vm4 = vcmp.ge.f32.partialorder %v2086_v44, 0.0  ;;  %v3739_v27 = vadd.f32 %v3670_v32, %v2239_v56 }
 0x21b   : > { %v3601_v57 = vpop.f32.mrb[48].mxu0  ;;  %vm2183_vm5 = vcmp.ge.f32.partialorder %v2081_v4, 0.0  ;;  %v2216_v18 = vsel %vm2184_vm4, %v3645_v19, %v3650_v20 }
 0x21c   : > { %v3603_v58 = vpop.f32.mrb[49].mxu0  ;;  %v2096_v48 = vadd.f32 %v3601_v57, %v3636_v14  ;;  %v2215_v22 = vsel %vm2183_vm5, %v3645_v19, %v3650_v20  ;;  %v2248_v29 = vmul.f32 %v2216_v18, %v2086_v44 }
 0x21d   : > { %v2091_v50 = vadd.f32 %v3636_v14, %v3603_v58  ;;  %v2211_v58 = vsel %vm2179_vm1, %v3645_v19, %v3650_v20  ;;  %v2247_v54 = vmul.f32 %v2215_v22, %v2081_v4 }
 0x21e   : > { %vm2186_vm7 = vcmp.ge.f32.partialorder %v2096_v48, 0.0  ;;  %v2243_v24 = vmul.f32 %v2211_v58, %v2061_v40  ;;  %v3768_v5 = vadd.f32 %v3670_v32, %v2248_v29 }
 0x21f   : > { %v3605_v59 = vpop.f32.mrb[50].mxu0  ;;  %vm2185_vm6 = vcmp.ge.f32.partialorder %v2091_v50, 0.0  ;;  %v2218_v26 = vsel %vm2186_vm7, %v3645_v19, %v3650_v20  ;;  %v3773_v52 = vadd.f32 %v3670_v32, %v2247_v54 }
 0x220   : > { %v3607_v61 = vpop.f32.mrb[51].mxu0  ;;  %v2106_v55 = vadd.f32 %v3605_v59, %v3636_v14  ;;  %v2213_v59 = vsel %vm2181_vm3, %v3645_v19, %v3650_v20  ;;  %v2217_v30 = vsel %vm2185_vm6, %v3645_v19, %v3650_v20  ;;  %v3759_v41 = vadd.f32 %v3670_v32, %v2243_v24 }
 0x221   : > { %v2101_v57 = vadd.f32 %v3636_v14, %v3607_v61  ;;  %v2244_v61 = vmul.f32 %v2212_v11, %v2066_v39  ;;  %v2245_v28 = vmul.f32 %v2213_v59, %v2071_v43  ;;  %v2250_v39 = vmul.f32 %v2218_v26, %v2096_v48 }
 0x222   : > { %vm2188_vm8 = vcmp.ge.f32.partialorder %v2106_v55, 0.0  ;;  %v3762_v43 = vadd.f32 %v3670_v32, %v2246_v25  ;;  %v2249_v44 = vmul.f32 %v2217_v30, %v2091_v50 }
 0x223   : > { %v3609_v62 = vpop.f32.mrb[52].mxu0  ;;  %vm2187_vm9 = vcmp.ge.f32.partialorder %v2101_v57, 0.0  ;;  %v2220_v60 = vsel %vm2188_vm8, %v3645_v19, %v3650_v20  ;;  %v3753_v35 = vadd.f32 %v3670_v32, %v2244_v61  ;;  %v3765_v4 = vadd.f32 %v3670_v32, %v2245_v28 }
 0x224   : > { %v3611_v63 = vpop.f32.mrb[53].mxu0  ;;  %v2219_v2 = vsel %vm2187_vm9, %v3645_v19, %v3650_v20  ;;  %v2252_v47 = vmul.f32 %v2220_v60, %v2106_v55  ;;  %v3779_v16 = vadd.f32 %v3670_v32, %v2250_v39  ;;  %v3783_v59 = vadd.f32 %v3670_v32, %v2249_v44 }
 0x225   : > { %v2251_v56 = vmul.f32 %v2219_v2, %v2101_v57  ;;  %v2116_v18 = vadd.f32 %v3609_v62, %v3636_v14  ;;  %v2111_v22 = vadd.f32 %v3636_v14, %v3611_v63 }
 0x226   : > { %v3789_v61 = vadd.f32 %v3670_v32, %v2252_v47 }
 0x227   : > { %v3613_v0 = vpop.f32.mrb[54].mxu0  ;;  %v3803_v26 = vadd.f32 %v3670_v32, %v2251_v56  ;;  %vm2190_vm14 = vcmp.ge.f32.partialorder %v2116_v18, 0.0  ;;  %vm2189_vm0 = vcmp.ge.f32.partialorder %v2111_v22, 0.0 }
 0x228   : > { %v3615_v1 = vpop.f32.mrb[55].mxu0 }
 0x22b   : > { %v3617_v3 = vpop.f32.mrb[56].mxu0 }
 0x22c   : > { %v3619_v6 = vpop.f32.mrb[57].mxu0 }
 0x22f   : > { %v3621_v7 = vpop.f32.mrb[58].mxu0 }
 0x230   : > { %v3623_v8 = vpop.f32.mrb[59].mxu0 }
 0x233   : > { %v3625_v9 = vpop.f32.mrb[60].mxu0 }
 0x234   : > { %v3627_v10 = vpop.f32.mrb[61].mxu0 }
 0x237   : > { %v3629_v12 = vpop.f32.mrb[62].mxu0 }
 0x238   : > { %v3631_v13 = vpop.f32.mrb[63].mxu0 }
 0x2a1   : > { %v2840_v31 = vpop.f32.mrb[32].mxu1 }
 0x2a2   : > { %v1509_v33 = vadd.f32 %v2840_v31, %v3734_v23  ;;  %v1503_v34 = vpop.f32.mrb[33].mxu1 }
 0x2a3   : > { %v1504_v40 = vadd.f32 %v3734_v23, %v1503_v34 }
 0x2a4   : > { %vm1663_vm10 = vcmp.ge.f32.partialorder %v1509_v33, 0.0 }
 0x2a5   : > { %v1703_v48 = vsel %vm1663_vm10, %v3645_v19, %v3650_v20  ;;  %vm1662_vm11 = vcmp.ge.f32.partialorder %v1504_v40, 0.0  ;;  %v2843_v49 = vpop.f32.mrb[34].mxu1 }
 0x2a6   : > { %v1735_v11 = vmul.f32 %v1703_v48, %v1509_v33  ;;  %v1702_v50 = vsel %vm1662_vm11, %v3645_v19, %v3650_v20  ;;  %v1519_v15 = vadd.f32 %v2843_v49, %v3734_v23  ;;  %v1513_v58 = vpop.f32.mrb[35].mxu1 }
 0x2a7   : > { %v1734_v55 = vmul.f32 %v1702_v50, %v1504_v40  ;;  %v1514_v17 = vadd.f32 %v3734_v23, %v1513_v58  ;;  %v2121_v40 = vadd.f32 %v3636_v14, %v3615_v1 }
 0x2a8   : > { %v1771_v57 = vadd.f32 %v3670_v32, %v1735_v11  ;;  %vm1665_vm12 = vcmp.ge.f32.partialorder %v1519_v15, 0.0 }
 0x2a9   : > { %v1770_v24 = vadd.f32 %v3670_v32, %v1734_v55  ;;  %v1705_v62 = vsel %vm1665_vm12, %v3645_v19, %v3650_v20  ;;  %vm1664_vm13 = vcmp.ge.f32.partialorder %v1514_v17, 0.0  ;;  %v2846_v25 = vpop.f32.mrb[36].mxu1  ;;  %vm2191_vm5 = vcmp.ge.f32.partialorder %v2121_v40, 0.0 }
 0x2aa   : > { %v2298_v28 = vadd.f32 %v3676_v36, %v1771_v57  ;;  %v1737_v63 = vmul.f32 %v1705_v62, %v1519_v15  ;;  %v1704_v29 = vsel %vm1664_vm13, %v3645_v19, %v3650_v20  ;;  %v1529_v30 = vadd.f32 %v2846_v25, %v3734_v23  ;;  %v1523_v31 = vpop.f32.mrb[37].mxu1 }
 0x2ab   : > { %v2297_v54 = vadd.f32 %v3679_v37, %v1770_v24  ;;  %v1736_v60 = vmul.f32 %v1704_v29, %v1514_v17  ;;  %v1524_v33 = vadd.f32 %v3734_v23, %v1523_v31  ;;  %v2126_v36 = vadd.f32 %v3613_v0, %v3636_v14 }
 0x2ac   : > { %2330 = vst [vmem:[%s3797_s19 + $0x8] sm:$0xff] %v2298_v28  ;;  %v1773_v34 = vadd.f32 %v3670_v32, %v1737_v63  ;;  %vm1667_vm15 = vcmp.ge.f32.partialorder %v1529_v30, 0.0  ;;  %v2222_v15 = vsel %vm2190_vm14, %v3645_v19, %v3650_v20 }
 0x2ad   : > { %2329 = vst [vmem:[%s3797_s19] sm:$0xff] %v2297_v54  ;;  %v1772_v39 = vadd.f32 %v3670_v32, %v1736_v60  ;;  %v1707_v2 = vsel %vm1667_vm15, %v3645_v19, %v3650_v20  ;;  %vm1666_vm1 = vcmp.ge.f32.partialorder %v1524_v33, 0.0  ;;  %v2849_v37 = vpop.f32.mrb[38].mxu1  ;;  %vm2192_vm3 = vcmp.ge.f32.partialorder %v2126_v36, 0.0 }
 0x2ae   : > { %v2300_v44 = vadd.f32 %v3682_v38, %v1773_v34  ;;  %v1739_v47 = vmul.f32 %v1707_v2, %v1529_v30  ;;  %v1706_v48 = vsel %vm1666_vm1, %v3645_v19, %v3650_v20  ;;  %v1539_v0 = vadd.f32 %v2849_v37, %v3734_v23  ;;  %v1533_v49 = vpop.f32.mrb[39].mxu1 }
 0x2af   : > { %v2299_v56 = vadd.f32 %v3690_v42, %v1772_v39  ;;  %v1738_v11 = vmul.f32 %v1706_v48, %v1524_v33  ;;  %v1534_v50 = vadd.f32 %v3734_v23, %v1533_v49  ;;  %v2221_v38 = vsel %vm2189_vm0, %v3645_v19, %v3650_v20 }
 0x2b0   : > { %2332 = vst [vmem:[%s3797_s19 + $0x18] sm:$0xff] %v2300_v44  ;;  %v1775_v1 = vadd.f32 %v3670_v32, %v1739_v47  ;;  %vm1669_vm2 = vcmp.ge.f32.partialorder %v1539_v0, 0.0  ;;  %v2254_v30 = vmul.f32 %v2222_v15, %v2116_v18  ;;  %v2253_v54 = vmul.f32 %v2221_v38, %v2111_v22 }
 0x2b1   : > { %2331 = vst [vmem:[%s3797_s19 + $0x10] sm:$0xff] %v2299_v56  ;;  %v1774_v42 = vadd.f32 %v3670_v32, %v1738_v11  ;;  %v1709_v58 = vsel %vm1669_vm2, %v3645_v19, %v3650_v20  ;;  %vm1668_vm4 = vcmp.ge.f32.partialorder %v1534_v50, 0.0  ;;  %v2852_v55 = vpop.f32.mrb[40].mxu1  ;;  %v2223_v18 = vsel %vm2191_vm5, %v3645_v19, %v3650_v20 }
 0x2b2   : > { %v2302_v17 = vadd.f32 %v3695_v45, %v1775_v1  ;;  %v1741_v57 = vmul.f32 %v1709_v58, %v1539_v0  ;;  %v1708_v24 = vsel %vm1668_vm4, %v3645_v19, %v3650_v20  ;;  %v1549_v62 = vadd.f32 %v2852_v55, %v3734_v23  ;;  %v1543_v25 = vpop.f32.mrb[41].mxu1 }
 0x2b3   : > { %v2301_v28 = vadd.f32 %v3698_v46, %v1774_v42  ;;  %v1740_v63 = vmul.f32 %v1708_v24, %v1534_v50  ;;  %v1544_v29 = vadd.f32 %v3734_v23, %v1543_v25  ;;  %v2224_v45 = vsel %vm2192_vm3, %v3645_v19, %v3650_v20 }
 0x2b4   : > { %2334 = vst [vmem:[%s3797_s19 + $0x28] sm:$0xff] %v2302_v17  ;;  %v1777_v31 = vadd.f32 %v3670_v32, %v1741_v57  ;;  %vm1671_vm7 = vcmp.ge.f32.partialorder %v1549_v62, 0.0  ;;  %v3864_v0 = vadd.f32 %v3670_v32, %v2254_v30  ;;  %v2256_v56 = vmul.f32 %v2224_v45, %v2126_v36 }
 0x2b5   : > { %2333 = vst [vmem:[%s3797_s19 + $0x20] sm:$0xff] %v2301_v28  ;;  %v1776_v60 = vadd.f32 %v3670_v32, %v1740_v63  ;;  %v1711_v46 = vsel %vm1671_vm7, %v3645_v19, %v3650_v20  ;;  %vm1670_vm6 = vcmp.ge.f32.partialorder %v1544_v29, 0.0  ;;  %v2855_v33 = vpop.f32.mrb[42].mxu1  ;;  %v2255_v15 = vmul.f32 %v2223_v18, %v2121_v40 }
 0x2b6   : > { %v2304_v22 = vadd.f32 %v3727_v21, %v1777_v31  ;;  %v1743_v34 = vmul.f32 %v1711_v46, %v1549_v62  ;;  %v1710_v39 = vsel %vm1670_vm6, %v3645_v19, %v3650_v20  ;;  %v1559_v2 = vadd.f32 %v2855_v33, %v3734_v23  ;;  %v1553_v37 = vpop.f32.mrb[43].mxu1 }
 0x2b7   : > { %v2303_v44 = vadd.f32 %v3739_v27, %v1776_v60  ;;  %v1742_v47 = vmul.f32 %v1710_v39, %v1544_v29  ;;  %v1554_v48 = vadd.f32 %v3734_v23, %v1553_v37  ;;  %v3869_v21 = vadd.f32 %v3670_v32, %v2253_v54 }
 0x2b8   : > { %2336 = vst [vmem:[%s3797_s19 + $0x38] sm:$0xff] %v2304_v22  ;;  %v1779_v49 = vadd.f32 %v3670_v32, %v1743_v34  ;;  %vm1673_vm8 = vcmp.ge.f32.partialorder %v1559_v2, 0.0  ;;  %v2136_v24 = vadd.f32 %v3617_v3, %v3636_v14  ;;  %v2131_v62 = vadd.f32 %v3636_v14, %v3619_v6 }
 0x2b9   : > { %2335 = vst [vmem:[%s3797_s19 + $0x30] sm:$0xff] %v2303_v44  ;;  %v1778_v11 = vadd.f32 %v3670_v32, %v1742_v47  ;;  %v1713_v27 = vsel %vm1673_vm8, %v3645_v19, %v3650_v20  ;;  %vm1672_vm9 = vcmp.ge.f32.partialorder %v1554_v48, 0.0  ;;  %v2858_v50 = vpop.f32.mrb[44].mxu1  ;;  %v3895_v3 = vadd.f32 %v3670_v32, %v2255_v15 }
 0x2ba   : > { %v2306_v1 = vadd.f32 %v3744_v51, %v1779_v49  ;;  %v1745_v38 = vmul.f32 %v1713_v27, %v1559_v2  ;;  %v1712_v42 = vsel %vm1672_vm9, %v3645_v19, %v3650_v20  ;;  %v1569_v58 = vadd.f32 %v2858_v50, %v3734_v23  ;;  %v1563_v36 = vpop.f32.mrb[45].mxu1 }
 0x2bb   : > { %v2305_v55 = vadd.f32 %v3747_v53, %v1778_v11  ;;  %v1744_v17 = vmul.f32 %v1712_v42, %v1554_v48  ;;  %v1564_v57 = vadd.f32 %v3734_v23, %v1563_v36  ;;  %v3886_v51 = vadd.f32 %v3670_v32, %v2256_v56 }
 0x2bc   : > { %2338 = vst [vmem:[%s3797_s19 + $0x48] sm:$0xff] %v2306_v1  ;;  %v1781_v40 = vadd.f32 %v3670_v32, %v1745_v38  ;;  %vm1675_vm10 = vcmp.ge.f32.partialorder %v1569_v58, 0.0  ;;  %vm2194_vm12 = vcmp.ge.f32.partialorder %v2136_v24, 0.0  ;;  %vm2193_vm14 = vcmp.ge.f32.partialorder %v2131_v62, 0.0 }
 0x2bd   : > { %2337 = vst [vmem:[%s3797_s19 + $0x40] sm:$0xff] %v2305_v55  ;;  %v1780_v53 = vadd.f32 %v3670_v32, %v1744_v17  ;;  %v1715_v25 = vsel %vm1675_vm10, %v3645_v19, %v3650_v20  ;;  %vm1674_vm11 = vcmp.ge.f32.partialorder %v1564_v57, 0.0  ;;  %v2861_v28 = vpop.f32.mrb[46].mxu1  ;;  %v2141_v22 = vadd.f32 %v3636_v14, %v3623_v8 }
 0x2be   : > { %v2308_v63 = vadd.f32 %v3753_v35, %v1781_v40  ;;  %v1747_v29 = vmul.f32 %v1715_v25, %v1569_v58  ;;  %v1714_v30 = vsel %vm1674_vm11, %v3645_v19, %v3650_v20  ;;  %v1579_v6 = vadd.f32 %v2861_v28, %v3734_v23  ;;  %v1573_v31 = vpop.f32.mrb[47].mxu1 }
 0x2bf   : > { %v2307_v54 = vadd.f32 %v3759_v41, %v1780_v53  ;;  %v1746_v45 = vmul.f32 %v1714_v30, %v1564_v57  ;;  %v1574_v60 = vadd.f32 %v3734_v23, %v1573_v31  ;;  %v2146_v35 = vadd.f32 %v3621_v7, %v3636_v14 }
 0x2c0   : > { %2340 = vst [vmem:[%s3797_s19 + $0x58] sm:$0xff] %v2308_v63  ;;  %v1783_v46 = vadd.f32 %v3670_v32, %v1747_v29  ;;  %vm1677_vm13 = vcmp.ge.f32.partialorder %v1579_v6, 0.0  ;;  %v2226_v49 = vsel %vm2194_vm12, %v3645_v19, %v3650_v20  ;;  %vm2195_vm3 = vcmp.ge.f32.partialorder %v2141_v22, 0.0 }
 0x2c1   : > { %2339 = vst [vmem:[%s3797_s19 + $0x50] sm:$0xff] %v2307_v54  ;;  %v1782_v33 = vadd.f32 %v3670_v32, %v1746_v45  ;;  %v1717_v18 = vsel %vm1677_vm13, %v3645_v19, %v3650_v20  ;;  %vm1676_vm15 = vcmp.ge.f32.partialorder %v1574_v60, 0.0  ;;  %v2864_v41 = vpop.f32.mrb[48].mxu1  ;;  %vm2196_vm1 = vcmp.ge.f32.partialorder %v2146_v35, 0.0 }
 0x2c2   : > { %v2310_v34 = vadd.f32 %v3762_v43, %v1783_v46  ;;  %v1749_v39 = vmul.f32 %v1717_v18, %v1579_v6  ;;  %v1716_v2 = vsel %vm1676_vm15, %v3645_v19, %v3650_v20  ;;  %v1589_v7 = vadd.f32 %v2864_v41, %v3734_v23  ;;  %v1583_v37 = vpop.f32.mrb[49].mxu1 }
 0x2c3   : > { %v2309_v44 = vadd.f32 %v3765_v4, %v1782_v33  ;;  %v1748_v47 = vmul.f32 %v1716_v2, %v1574_v60  ;;  %v1584_v48 = vadd.f32 %v3734_v23, %v1583_v37  ;;  %v2225_v43 = vsel %vm2193_vm14, %v3645_v19, %v3650_v20 }
 0x2c4   : > { %2342 = vst [vmem:[%s3797_s19 + $0x68] sm:$0xff] %v2310_v34  ;;  %v1785_v8 = vadd.f32 %v3670_v32, %v1749_v39  ;;  %vm1679_vm0 = vcmp.ge.f32.partialorder %v1589_v7, 0.0  ;;  %v2258_v55 = vmul.f32 %v2226_v49, %v2136_v24  ;;  %v2257_v57 = vmul.f32 %v2225_v43, %v2131_v62 }
 0x2c5   : > { %2341 = vst [vmem:[%s3797_s19 + $0x60] sm:$0xff] %v2309_v44  ;;  %v1784_v4 = vadd.f32 %v3670_v32, %v1748_v47  ;;  %v1719_v56 = vsel %vm1679_vm0, %v3645_v19, %v3650_v20  ;;  %vm1678_vm2 = vcmp.ge.f32.partialorder %v1584_v48, 0.0  ;;  %v2867_v11 = vpop.f32.mrb[50].mxu1  ;;  %v2227_v24 = vsel %vm2195_vm3, %v3645_v19, %v3650_v20 }
 0x2c6   : > { %v2312_v27 = vadd.f32 %v3768_v5, %v1785_v8  ;;  %v1751_v50 = vmul.f32 %v1719_v56, %v1589_v7  ;;  %v1718_v15 = vsel %vm1678_vm2, %v3645_v19, %v3650_v20  ;;  %v1599_v1 = vadd.f32 %v2867_v11, %v3734_v23  ;;  %v1593_v38 = vpop.f32.mrb[51].mxu1 }
 0x2c7   : > { %v2311_v42 = vadd.f32 %v3773_v52, %v1784_v4  ;;  %v1750_v58 = vmul.f32 %v1718_v15, %v1584_v48  ;;  %v1594_v36 = vadd.f32 %v3734_v23, %v1593_v38  ;;  %v2228_v5 = vsel %vm2196_vm1, %v3645_v19, %v3650_v20 }
 0x2c8   : > { %2344 = vst [vmem:[%s3797_s19 + $0x78] sm:$0xff] %v2312_v27  ;;  %v1787_v17 = vadd.f32 %v3670_v32, %v1751_v50  ;;  %vm1681_vm4 = vcmp.ge.f32.partialorder %v1599_v1, 0.0  ;;  %v3956_v54 = vadd.f32 %v3670_v32, %v2258_v55  ;;  %v2260_v60 = vmul.f32 %v2228_v5, %v2146_v35 }
 0x2c9   : > { %2343 = vst [vmem:[%s3797_s19 + $0x70] sm:$0xff] %v2311_v42  ;;  %v1786_v40 = vadd.f32 %v3670_v32, %v1750_v58  ;;  %v1721_v52 = vsel %vm1681_vm4, %v3645_v19, %v3650_v20  ;;  %vm1680_vm5 = vcmp.ge.f32.partialorder %v1594_v36, 0.0  ;;  %v2870_v53 = vpop.f32.mrb[52].mxu1  ;;  %v2259_v18 = vmul.f32 %v2227_v24, %v2141_v22 }
 0x2ca   : > { %v2314_v62 = vadd.f32 %v3779_v16, %v1787_v17  ;;  %v1753_v25 = vmul.f32 %v1721_v52, %v1599_v1  ;;  %v1720_v28 = vsel %vm1680_vm5, %v3645_v19, %v3650_v20  ;;  %v1609_v63 = vadd.f32 %v2870_v53, %v3734_v23  ;;  %v1603_v29 = vpop.f32.mrb[53].mxu1 }
 0x2cb   : > { %v2313_v30 = vadd.f32 %v3783_v59, %v1786_v40  ;;  %v1752_v6 = vmul.f32 %v1720_v28, %v1594_v36  ;;  %v1604_v31 = vadd.f32 %v3734_v23, %v1603_v29  ;;  %v3961_v16 = vadd.f32 %v3670_v32, %v2257_v57 }
 0x2cc   : > { %2346 = vst [vmem:[%s3797_s19 + $0x88] sm:$0xff] %v2314_v62  ;;  %v1789_v45 = vadd.f32 %v3670_v32, %v1753_v25  ;;  %vm1683_vm7 = vcmp.ge.f32.partialorder %v1609_v63, 0.0  ;;  %v2156_v47 = vadd.f32 %v3625_v9, %v3636_v14  ;;  %v2151_v48 = vadd.f32 %v3636_v14, %v3627_v10 }
 0x2cd   : > { %2345 = vst [vmem:[%s3797_s19 + $0x80] sm:$0xff] %v2313_v30  ;;  %v1788_v46 = vadd.f32 %v3670_v32, %v1752_v6  ;;  %v1723_v59 = vsel %vm1683_vm7, %v3645_v19, %v3650_v20  ;;  %vm1682_vm6 = vcmp.ge.f32.partialorder %v1604_v31, 0.0  ;;  %v2873_v33 = vpop.f32.mrb[54].mxu1  ;;  %v3987_v9 = vadd.f32 %v3670_v32, %v2259_v18 }
 0x2ce   : > { %v2316_v41 = vadd.f32 %v3789_v61, %v1789_v45  ;;  %v1755_v34 = vmul.f32 %v1723_v59, %v1609_v63  ;;  %v1722_v39 = vsel %vm1682_vm6, %v3645_v19, %v3650_v20  ;;  %v1619_v2 = vadd.f32 %v2873_v33, %v3734_v23  ;;  %v1613_v35 = vpop.f32.mrb[55].mxu1 }
 0x2cf   : > { %v2315_v7 = vadd.f32 %v3803_v26, %v1788_v46  ;;  %v1754_v37 = vmul.f32 %v1722_v39, %v1604_v31  ;;  %v1614_v44 = vadd.f32 %v3734_v23, %v1613_v35  ;;  %v3978_v61 = vadd.f32 %v3670_v32, %v2260_v60 }
 0x2d0   : > { %2348 = vst [vmem:[%s3797_s19 + $0x98] sm:$0xff] %v2316_v41  ;;  %v1791_v22 = vadd.f32 %v3670_v32, %v1755_v34  ;;  %vm1685_vm8 = vcmp.ge.f32.partialorder %v1619_v2, 0.0  ;;  %vm2198_vm10 = vcmp.ge.f32.partialorder %v2156_v47, 0.0  ;;  %vm2197_vm12 = vcmp.ge.f32.partialorder %v2151_v48, 0.0 }
 0x2d1   : > { %2347 = vst [vmem:[%s3797_s19 + $0x90] sm:$0xff] %v2315_v7  ;;  %v1790_v26 = vadd.f32 %v3670_v32, %v1754_v37  ;;  %v1725_v49 = vsel %vm1685_vm8, %v3645_v19, %v3650_v20  ;;  %vm1684_vm9 = vcmp.ge.f32.partialorder %v1614_v44, 0.0  ;;  %v2876_v8 = vpop.f32.mrb[56].mxu1  ;;  %v2161_v58 = vadd.f32 %v3636_v14, %v3631_v13 }
 0x2d2   : > { %v2318_v43 = vadd.f32 %v3864_v0, %v1791_v22  ;;  %v1757_v4 = vmul.f32 %v1725_v49, %v1619_v2  ;;  %v1724_v56 = vsel %vm1684_vm9, %v3645_v19, %v3650_v20  ;;  %v1629_v10 = vadd.f32 %v2876_v8, %v3734_v23  ;;  %v1623_v11 = vpop.f32.mrb[57].mxu1 }
 0x2d3   : > { %v2317_v27 = vadd.f32 %v3869_v21, %v1790_v26  ;;  %v1756_v50 = vmul.f32 %v1724_v56, %v1614_v44  ;;  %v1624_v15 = vadd.f32 %v3734_v23, %v1623_v11  ;;  %v2166_v0 = vadd.f32 %v3629_v12, %v3636_v14 }
 0x2d4   : > { %2350 = vst [vmem:[%s3797_s19 + $0xa8] sm:$0xff] %v2318_v43  ;;  %v1793_v1 = vadd.f32 %v3670_v32, %v1757_v4  ;;  %vm1687_vm11 = vcmp.ge.f32.partialorder %v1629_v10, 0.0  ;;  %v2230_v53 = vsel %vm2198_vm10, %v3645_v19, %v3650_v20  ;;  %v2229_v14 = vsel %vm2197_vm12, %v3645_v19, %v3650_v20 }
 0x2d5   : > { %2349 = vst [vmem:[%s3797_s19 + $0xa0] sm:$0xff] %v2317_v27  ;;  %v1792_v38 = vadd.f32 %v3670_v32, %v1756_v50  ;;  %v1727_v42 = vsel %vm1687_vm11, %v3645_v19, %v3650_v20  ;;  %vm1686_vm13 = vcmp.ge.f32.partialorder %v1624_v15, 0.0  ;;  %v2879_v21 = vpop.f32.mrb[58].mxu1  ;;  %vm2200_vm15 = vcmp.ge.f32.partialorder %v2166_v0, 0.0 }
 0x2d6   : > { %v2320_v36 = vadd.f32 %v3886_v51, %v1793_v1  ;;  %v1759_v55 = vmul.f32 %v1727_v42, %v1629_v10  ;;  %v1726_v17 = vsel %vm1686_vm13, %v3645_v19, %v3650_v20  ;;  %v1639_v12 = vadd.f32 %v2879_v21, %v3734_v23  ;;  %v1633_v57 = vpop.f32.mrb[59].mxu1 }
 0x2d7   : > { %v2319_v5 = vadd.f32 %v3895_v3, %v1792_v38  ;;  %v1758_v40 = vmul.f32 %v1726_v17, %v1624_v15  ;;  %v1634_v52 = vadd.f32 %v3734_v23, %v1633_v57  ;;  %vm2199_vm1 = vcmp.ge.f32.partialorder %v2161_v58, 0.0 }
 0x2d8   : > { %2352 = vst [vmem:[%s3797_s19 + $0xb8] sm:$0xff] %v2320_v36  ;;  %v1795_v13 = vadd.f32 %v3670_v32, %v1759_v55  ;;  %vm1689_vm14 = vcmp.ge.f32.partialorder %v1639_v12, 0.0  ;;  %v2262_v31 = vmul.f32 %v2230_v53, %v2156_v47  ;;  %v2261_v46 = vmul.f32 %v2229_v14, %v2151_v48 }
 0x2d9   : > { %2351 = vst [vmem:[%s3797_s19 + $0xb0] sm:$0xff] %v2319_v5  ;;  %v1794_v51 = vadd.f32 %v3670_v32, %v1758_v40  ;;  %v1729_v3 = vsel %vm1689_vm14, %v3645_v19, %v3650_v20  ;;  %vm1688_vm0 = vcmp.ge.f32.partialorder %v1634_v52, 0.0  ;;  %v2882_v24 = vpop.f32.mrb[60].mxu1  ;;  %v2231_v33 = vsel %vm2199_vm1, %v3645_v19, %v3650_v20 }
 0x2da   : > { %v2322_v62 = vadd.f32 %v3956_v54, %v1795_v13  ;;  %v1761_v25 = vmul.f32 %v1729_v3, %v1639_v12  ;;  %v1728_v28 = vsel %vm1688_vm0, %v3645_v19, %v3650_v20  ;;  %v1649_v63 = vadd.f32 %v2882_v24, %v3734_v23  ;;  %v1643_v29 = vpop.f32.mrb[61].mxu1 }
 0x2db   : > { %v2321_v30 = vadd.f32 %v3961_v16, %v1794_v51  ;;  %v1760_v6 = vmul.f32 %v1728_v28, %v1634_v52  ;;  %v1644_v45 = vadd.f32 %v3734_v23, %v1643_v29  ;;  %v2232_v54 = vsel %vm2200_vm15, %v3645_v19, %v3650_v20 }
 0x2dc   : > { %2354 = vst [vmem:[%s3797_s19 + $0xc8] sm:$0xff] %v2322_v62  ;;  %v1797_v60 = vadd.f32 %v3670_v32, %v1761_v25  ;;  %vm1691_vm2 = vcmp.ge.f32.partialorder %v1649_v63, 0.0  ;;  %v2294_v37 = vadd.f32 %v3670_v32, %v2262_v31  ;;  %v2293_v22 = vadd.f32 %v3670_v32, %v2261_v46 }
 0x2dd   : > { %2353 = vst [vmem:[%s3797_s19 + $0xc0] sm:$0xff] %v2321_v30  ;;  %v1796_v59 = vadd.f32 %v3670_v32, %v1760_v6  ;;  %v1731_v16 = vsel %vm1691_vm2, %v3645_v19, %v3650_v20  ;;  %vm1690_vm3 = vcmp.ge.f32.partialorder %v1644_v45, 0.0  ;;  %v2885_v18 = vpop.f32.mrb[62].mxu1  ;;  %v2264_v48 = vmul.f32 %v2232_v54, %v2166_v0 }
 0x2de   : > { %v2324_v41 = vadd.f32 %v3978_v61, %v1797_v60  ;;  %v1763_v34 = vmul.f32 %v1731_v16, %v1649_v63  ;;  %v1730_v39 = vsel %vm1690_vm3, %v3645_v19, %v3650_v20  ;;  %v1659_v2 = vadd.f32 %v2885_v18, %v3734_v23  ;;  %v1653_v35 = vpop.f32.mrb[63].mxu1 }
 0x2df   : > { %v2323_v7 = vadd.f32 %v3987_v9, %v1796_v59  ;;  %v1762_v44 = vmul.f32 %v1730_v39, %v1644_v45  ;;  %v1654_v47 = vadd.f32 %v3734_v23, %v1653_v35  ;;  %v2263_v49 = vmul.f32 %v2231_v33, %v2161_v58 }
 0x2e0   : > { %2356 = vst [vmem:[%s3797_s19 + $0xd8] sm:$0xff] %v2324_v41  ;;  %v1799_v61 = vadd.f32 %v3670_v32, %v1763_v34  ;;  %vm1693_vm4 = vcmp.ge.f32.partialorder %v1659_v2, 0.0  ;;  %v2296_v10 = vadd.f32 %v3670_v32, %v2264_v48 }
 0x2e1   : > { %2355 = vst [vmem:[%s3797_s19 + $0xd0] sm:$0xff] %v2323_v7  ;;  %v1798_v26 = vadd.f32 %v3670_v32, %v1762_v44  ;;  %v1733_v8 = vsel %vm1693_vm4, %v3645_v19, %v3650_v20  ;;  %vm1692_vm5 = vcmp.ge.f32.partialorder %v1654_v47, 0.0  ;;  %v2295_v27 = vadd.f32 %v3670_v32, %v2263_v49 }
 0x2e2   : > { %v2326_v23 = vadd.f32 %v2294_v37, %v1799_v61  ;;  %v1765_v9 = vmul.f32 %v1733_v8, %v1659_v2  ;;  %v1732_v43 = vsel %vm1692_vm5, %v3645_v19, %v3650_v20 }
 0x2e3   : > { %v2325_v4 = vadd.f32 %v2293_v22, %v1798_v26  ;;  %v1764_v56 = vmul.f32 %v1732_v43, %v1654_v47 }
 0x2e4   : > { %2358 = vst [vmem:[%s3797_s19 + $0xe8] sm:$0xff] %v2326_v23  ;;  %v1801_v11 = vadd.f32 %v3670_v32, %v1765_v9 }
 0x2e5   : > { %2357 = vst [vmem:[%s3797_s19 + $0xe0] sm:$0xff] %v2325_v4  ;;  %v1800_v50 = vadd.f32 %v3670_v32, %v1764_v56 }
 0x2e6   : > { %v2328_v15 = vadd.f32 %v2296_v10, %v1801_v11 }
 0x2e7   : > { %v2327_v1 = vadd.f32 %v2295_v27, %v1800_v50 }
 0x2e8   : > { %2360 = vst [vmem:[%s3797_s19 + $0xf8] sm:$0xff] %v2328_v15 }
 0x2e9   : > { %2359 = vst [vmem:[%s3797_s19 + $0xf0] sm:$0xff] %v2327_v1 }
 0x2ea PF: > { %s19_s30 = sadd.s32 1, %s2992_s30  }
 0x2eb   : > { %p16_p4 = scmp.ge.s32.totalorder %s19_s30, 4  }
 0x2ed   :  { %18 = sbr.rel (!%p16_p4) target bundleno = 1 (0x1), region = 89 }

</bundles_post_ra>
